<compile_context>
chip_gen: v7x
topology: tpu7x:2x2x1
jax: 0.10.0
libtpu: 0.0.40
codegen_flags: <defaults>
</compile_context>

<pallas_src>
import math

import jax
import jax.numpy as jnp
from jax.experimental import pallas as pl
from jax.experimental.pallas import tpu as pltpu

_V_CHUNK = 128   # vocab-axis chunk height for the one-hot / MXU accumulation


def _round_up(x, m):
    return ((x + m - 1) // m) * m


def _cdiv(a, b):
    return -(-a // b)


def _choose_tile_p(P, cap=1024):
    """Lane-tile size for the flattened pair axis P = N*N.

    Multiple of 128 (full lanes -> unmasked stores), <= cap, and >= 2 grid
    steps whenever there is more than one 128-lane group of real work so
    v7x's two TensorCores both get a share (no-op on v5e/v6e).
    """
    P128 = _round_up(P, 128)
    if P128 <= 128:
        return 128
    n_tiles = max(2, _cdiv(P128, cap))
    return _round_up(_cdiv(P, n_tiles), 128)


def node_embedding_kernel(idx_ref, invlen_ref, twT_ref, out_ref):
    """out[h, p] = inv_len[p] * sum_v twT[h, v] * #{ l : idx[l, p] == v }

    idx_ref    : [L, TILE_P]   int32   LCA indices (pairs on lanes)
    invlen_ref : [1, TILE_P]   float32 1 / lca_len (precomputed in wrapper)
    twT_ref    : [H, V_pad]    float32 folded (table @ w) projection, transposed
    out_ref    : [H, TILE_P]   float32 lane-dense output tile
    """
    L, TP = idx_ref.shape
    H, V_pad = twT_ref.shape

    idx = idx_ref[...]                                           # [L, TP]
    acc = jnp.zeros((H, TP), dtype=jnp.float32)                  # tiny accumulator

    # Chunk the vocab axis: the [V_CHUNK, TILE_P] one-hot tile is built and
    # immediately consumed by the MXU; the full [V_pad, TILE_P] one-hot never
    # exists, so the old VMEM ld/st bottleneck is gone.
    for c in range(V_pad // _V_CHUNK):
        base = c * _V_CHUNK
        vids = base + jax.lax.broadcasted_iota(
            jnp.int32, (_V_CHUNK, TP), 0)                        # [Vc, TP]
        # cnt[v, p] = #{ l : idx[l, p] == base + v }  (L small & static).
        cnt = (idx[0:1, :] == vids).astype(jnp.float32)
        for l in range(1, L):
            cnt = cnt + (idx[l:l + 1, :] == vids).astype(jnp.float32)
        # Gather + sum-over-L + per-head projection for this chunk in one MXU
        # matmul: [H, Vc] @ [Vc, TP] -> [H, TP], accumulated in f32.
        acc = acc + jnp.dot(twT_ref[:, base:base + _V_CHUNK], cnt,
                            preferred_element_type=jnp.float32)

    out_ref[...] = acc * invlen_ref[...]                         # [H, TP]


def node_embedding_feature(agent_lca, lca_len, emb_table, w_proj, tile_cap=1024):
    """agent_lca: [N, N, L] int32, lca_len: [N, N] int32,
    emb_table: [V, H*D] f32, w_proj: [D] f32 -> returns [H, N, N] f32."""
    N, _, L = agent_lca.shape
    V, HD = emb_table.shape
    D = w_proj.shape[0]
    H = HD // D
    P = N * N

    # --- Fold the head projection into the table (wrapper-side, tiny). -------
    # tw[v, h] = sum_d emb[v, h, d] * w[d]; padded vocab columns stay zero.
    tw = jnp.einsum('vhd,d->vh', emb_table.reshape(V, H, D), w_proj)
    V_pad = _round_up(V, _V_CHUNK)
    twT = jnp.zeros((H, V_pad), jnp.float32).at[:, :V].set(tw.T)  # [H, V_pad]

    # --- Lane-dense transposed inputs, adaptively tiled along P. -------------
    TILE_P = _choose_tile_p(P, tile_cap)
    n_tiles = _cdiv(P, TILE_P)
    P_pad = n_tiles * TILE_P

    idx = agent_lca.reshape(P, L).astype(jnp.int32).T             # [L, P]
    # Padded pair slots: index V (zero twT column) and inv_len = 1.
    idx_T = jnp.full((L, P_pad), V, dtype=jnp.int32).at[:, :P].set(idx)
    inv_len = jnp.ones((1, P_pad), jnp.float32).at[:, :P].set(
        1.0 / lca_len.reshape(1, P).astype(jnp.float32))

    out_hp = pl.pallas_call(
        node_embedding_kernel,
        out_shape=jax.ShapeDtypeStruct((H, P_pad), jnp.float32),
        grid=(n_tiles,),
        in_specs=[
            pl.BlockSpec((L, TILE_P), lambda i: (0, i)),
            pl.BlockSpec((1, TILE_P), lambda i: (0, i)),
            pl.BlockSpec((H, V_pad), lambda i: (0, 0)),   # resident across grid
        ],
        out_specs=pl.BlockSpec((H, TILE_P), lambda i: (0, i)),
        compiler_params=pltpu.CompilerParams(
            dimension_semantics=("parallel",)),           # megacore shard on v7x
    )(idx_T, inv_len, twT)

    # [H, P_pad] -> [H, N, N]  (== squeeze(-1).permute(2, 0, 1) in the ref).
    return out_hp[:, :P].reshape(H, N, N)


def reference_forward(agent_lca, lca_len, emb_table, w_proj):
    """Plain-JAX reproduction of the PyTorch forward, for verification."""
    N, _, L = agent_lca.shape
    V, HD = emb_table.shape
    D = w_proj.shape[0]
    H = HD // D
    edge = emb_table[agent_lca.reshape(-1)].reshape(N, N, L, H, D)
    edge = edge.sum(axis=2) / lca_len[:, :, None, None].astype(jnp.float32)
    bias = jnp.einsum('ijhd,d->ijh', edge, w_proj)
    return jnp.transpose(bias, (2, 0, 1))


def _make_inputs(key, N, L, bus_num, H, D, n_layers):
    V = bus_num + 1
    k_emb, k_w, k_lca, k_len = jax.random.split(key, 4)

    # Deterministic parameter init (mirrors init_params).
    emb_table = 0.2 * jax.random.normal(k_emb, (V, H * D), dtype=jnp.float32)
    emb_table = emb_table.at[322].set(0.0)                  # padding_idx row
    w_proj = (0.02 / math.sqrt(n_layers)) * jax.random.normal(
        k_w, (D,), dtype=jnp.float32)                       # Linear(D,1).weight[0]

    # Synthetic graph data: lca_len in [1, L]; entries beyond the length are
    # padded with index 322 (the zero padding row), as the real data would be.
    lca_len = jax.random.randint(k_len, (N, N), 1, L + 1).astype(jnp.int32)
    raw_lca = jax.random.randint(k_lca, (N, N, L), 0, bus_num).astype(jnp.int32)
    pos = jnp.arange(L, dtype=jnp.int32)[None, None, :]
    agent_lca = jnp.where(pos < lca_len[:, :, None], raw_lca, jnp.int32(322))
    return agent_lca, lca_len, emb_table, w_proj


if __name__ == "__main__":
    bus_num = 322      # padding_idx is hard-coded to 322 in the module
    D = 32             # embed_dim
    H = 4              # attend_heads
    L = 5              # max(lca_len)
    n_layers = 2

    key = jax.random.PRNGKey(0)
    k1, k2 = jax.random.split(key)

    # Case 1: module-sized toy config (single 128-lane tile).
    agent_lca, lca_len, emb_table, w_proj = _make_inputs(k1, 8, L, bus_num, H, D, n_layers)
    out = jax.block_until_ready(node_embedding_feature(agent_lca, lca_len, emb_table, w_proj))
    ref = reference_forward(agent_lca, lca_len, emb_table, w_proj)
    assert out.shape == (H, 8, 8)
    assert jnp.allclose(out, ref, rtol=1e-5, atol=1e-5)

    # Case 2: larger agent count -> 2 balanced tiles (exercises the parallel grid).
    agent_lca, lca_len, emb_table, w_proj = _make_inputs(k2, 24, L, bus_num, H, D, n_layers)
    out = jax.block_until_ready(node_embedding_feature(agent_lca, lca_len, emb_table, w_proj))
    ref = reference_forward(agent_lca, lca_len, emb_table, w_proj)
    assert out.shape == (H, 24, 24)
    assert jnp.allclose(out, ref, rtol=1e-5, atol=1e-5)

    print("KERNEL_OK")
</pallas_src>

<mosaic_0001>
module attributes {stable_mosaic.version = 11 : i64} {
  func.func @node_embedding_kernel(%arg0: i32, %arg1: memref<5x128xi32, #tpu.memory_space<vmem>>, %arg2: memref<1x128xf32, #tpu.memory_space<vmem>>, %arg3: memref<4x384xf32, #tpu.memory_space<vmem>>, %arg4: memref<4x128xf32, #tpu.memory_space<vmem>>) attributes {dimension_semantics = [#tpu.dimension_semantics<parallel>], iteration_bounds = array<i64: 1>, scalar_prefetch = 0 : i64, scratch_operands = 0 : i64, tpu.core_type = #tpu.core_type<tc>, window_params = [{transform_indices = @transform_0, window_bounds = array<i64: 5, 128>}, {transform_indices = @transform_1, window_bounds = array<i64: 1, 128>}, {pipeline_mode = #tpu.pipeline_mode<synchronous>, transform_indices = @transform_2, window_bounds = array<i64: 4, 384>}, {transform_indices = @transform_3, window_bounds = array<i64: 4, 128>}]} {
    %c0 = arith.constant 0 : index
    %c0_0 = arith.constant 0 : index
    %0 = vector.load %arg1[%c0, %c0_0] : memref<5x128xi32, #tpu.memory_space<vmem>>, vector<5x128xi32>
    %cst = arith.constant 0.000000e+00 : f32
    %1 = vector.broadcast %cst : f32 to vector<4x128xf32>
    %2 = tpu.iota {dimensions = array<i32: 0>} : vector<128x128xi32>
    %c0_i32 = arith.constant 0 : i32
    %3 = vector.broadcast %c0_i32 : i32 to vector<128x128xi32>
    %4 = arith.addi %3, %2 : vector<128x128xi32>
    %5 = vector.extract_strided_slice %0 {offsets = [0, 0], sizes = [1, 128], strides = [1, 1]} : vector<5x128xi32> to vector<1x128xi32>
    %6 = vector.broadcast %5 : vector<1x128xi32> to vector<128x128xi32>
    %7 = arith.cmpi eq, %6, %4 : vector<128x128xi32>
    %8 = arith.extui %7 : vector<128x128xi1> to vector<128x128xi32>
    %9 = arith.sitofp %8 : vector<128x128xi32> to vector<128x128xf32>
    %10 = vector.extract_strided_slice %0 {offsets = [1, 0], sizes = [1, 128], strides = [1, 1]} : vector<5x128xi32> to vector<1x128xi32>
    %11 = vector.broadcast %10 : vector<1x128xi32> to vector<128x128xi32>
    %12 = arith.cmpi eq, %11, %4 : vector<128x128xi32>
    %13 = arith.extui %12 : vector<128x128xi1> to vector<128x128xi32>
    %14 = arith.sitofp %13 : vector<128x128xi32> to vector<128x128xf32>
    %15 = arith.addf %9, %14 : vector<128x128xf32>
    %16 = vector.extract_strided_slice %0 {offsets = [2, 0], sizes = [1, 128], strides = [1, 1]} : vector<5x128xi32> to vector<1x128xi32>
    %17 = vector.broadcast %16 : vector<1x128xi32> to vector<128x128xi32>
    %18 = arith.cmpi eq, %17, %4 : vector<128x128xi32>
    %19 = arith.extui %18 : vector<128x128xi1> to vector<128x128xi32>
    %20 = arith.sitofp %19 : vector<128x128xi32> to vector<128x128xf32>
    %21 = arith.addf %15, %20 : vector<128x128xf32>
    %22 = vector.extract_strided_slice %0 {offsets = [3, 0], sizes = [1, 128], strides = [1, 1]} : vector<5x128xi32> to vector<1x128xi32>
    %23 = vector.broadcast %22 : vector<1x128xi32> to vector<128x128xi32>
    %24 = arith.cmpi eq, %23, %4 : vector<128x128xi32>
    %25 = arith.extui %24 : vector<128x128xi1> to vector<128x128xi32>
    %26 = arith.sitofp %25 : vector<128x128xi32> to vector<128x128xf32>
    %27 = arith.addf %21, %26 : vector<128x128xf32>
    %28 = vector.extract_strided_slice %0 {offsets = [4, 0], sizes = [1, 128], strides = [1, 1]} : vector<5x128xi32> to vector<1x128xi32>
    %29 = vector.broadcast %28 : vector<1x128xi32> to vector<128x128xi32>
    %30 = arith.cmpi eq, %29, %4 : vector<128x128xi32>
    %31 = arith.extui %30 : vector<128x128xi1> to vector<128x128xi32>
    %32 = arith.sitofp %31 : vector<128x128xi32> to vector<128x128xf32>
    %33 = arith.addf %27, %32 : vector<128x128xf32>
    %c0_1 = arith.constant 0 : index
    %c0_2 = arith.constant 0 : index
    %34 = vector.load %arg3[%c0_1, %c0_2] : memref<4x384xf32, #tpu.memory_space<vmem>>, vector<4x128xf32>
    %cst_3 = arith.constant dense<0.000000e+00> : vector<4x128xf32>
    %35 = tpu.matmul %34, %33, %cst_3 {dimension_numbers = #tpu.dot_dimension_numbers<[1], [0], [0], [1], [0, 0, 1, 1], [], []>} : vector<4x128xf32>, vector<128x128xf32>, vector<4x128xf32> -> vector<4x128xf32>
    %36 = arith.addf %1, %35 : vector<4x128xf32>
    %37 = tpu.iota {dimensions = array<i32: 0>} : vector<128x128xi32>
    %c128_i32 = arith.constant 128 : i32
    %38 = vector.broadcast %c128_i32 : i32 to vector<128x128xi32>
    %39 = arith.addi %38, %37 : vector<128x128xi32>
    %40 = vector.extract_strided_slice %0 {offsets = [0, 0], sizes = [1, 128], strides = [1, 1]} : vector<5x128xi32> to vector<1x128xi32>
    %41 = vector.broadcast %40 : vector<1x128xi32> to vector<128x128xi32>
    %42 = arith.cmpi eq, %41, %39 : vector<128x128xi32>
    %43 = arith.extui %42 : vector<128x128xi1> to vector<128x128xi32>
    %44 = arith.sitofp %43 : vector<128x128xi32> to vector<128x128xf32>
    %45 = vector.extract_strided_slice %0 {offsets = [1, 0], sizes = [1, 128], strides = [1, 1]} : vector<5x128xi32> to vector<1x128xi32>
    %46 = vector.broadcast %45 : vector<1x128xi32> to vector<128x128xi32>
    %47 = arith.cmpi eq, %46, %39 : vector<128x128xi32>
    %48 = arith.extui %47 : vector<128x128xi1> to vector<128x128xi32>
    %49 = arith.sitofp %48 : vector<128x128xi32> to vector<128x128xf32>
    %50 = arith.addf %44, %49 : vector<128x128xf32>
    %51 = vector.extract_strided_slice %0 {offsets = [2, 0], sizes = [1, 128], strides = [1, 1]} : vector<5x128xi32> to vector<1x128xi32>
    %52 = vector.broadcast %51 : vector<1x128xi32> to vector<128x128xi32>
    %53 = arith.cmpi eq, %52, %39 : vector<128x128xi32>
    %54 = arith.extui %53 : vector<128x128xi1> to vector<128x128xi32>
    %55 = arith.sitofp %54 : vector<128x128xi32> to vector<128x128xf32>
    %56 = arith.addf %50, %55 : vector<128x128xf32>
    %57 = vector.extract_strided_slice %0 {offsets = [3, 0], sizes = [1, 128], strides = [1, 1]} : vector<5x128xi32> to vector<1x128xi32>
    %58 = vector.broadcast %57 : vector<1x128xi32> to vector<128x128xi32>
    %59 = arith.cmpi eq, %58, %39 : vector<128x128xi32>
    %60 = arith.extui %59 : vector<128x128xi1> to vector<128x128xi32>
    %61 = arith.sitofp %60 : vector<128x128xi32> to vector<128x128xf32>
    %62 = arith.addf %56, %61 : vector<128x128xf32>
    %63 = vector.extract_strided_slice %0 {offsets = [4, 0], sizes = [1, 128], strides = [1, 1]} : vector<5x128xi32> to vector<1x128xi32>
    %64 = vector.broadcast %63 : vector<1x128xi32> to vector<128x128xi32>
    %65 = arith.cmpi eq, %64, %39 : vector<128x128xi32>
    %66 = arith.extui %65 : vector<128x128xi1> to vector<128x128xi32>
    %67 = arith.sitofp %66 : vector<128x128xi32> to vector<128x128xf32>
    %68 = arith.addf %62, %67 : vector<128x128xf32>
    %c0_4 = arith.constant 0 : index
    %c128 = arith.constant 128 : index
    %69 = vector.load %arg3[%c0_4, %c128] : memref<4x384xf32, #tpu.memory_space<vmem>>, vector<4x128xf32>
    %cst_5 = arith.constant dense<0.000000e+00> : vector<4x128xf32>
    %70 = tpu.matmul %69, %68, %cst_5 {dimension_numbers = #tpu.dot_dimension_numbers<[1], [0], [0], [1], [0, 0, 1, 1], [], []>} : vector<4x128xf32>, vector<128x128xf32>, vector<4x128xf32> -> vector<4x128xf32>
    %71 = arith.addf %36, %70 : vector<4x128xf32>
    %72 = tpu.iota {dimensions = array<i32: 0>} : vector<128x128xi32>
    %c256_i32 = arith.constant 256 : i32
    %73 = vector.broadcast %c256_i32 : i32 to vector<128x128xi32>
    %74 = arith.addi %73, %72 : vector<128x128xi32>
    %75 = vector.extract_strided_slice %0 {offsets = [0, 0], sizes = [1, 128], strides = [1, 1]} : vector<5x128xi32> to vector<1x128xi32>
    %76 = vector.broadcast %75 : vector<1x128xi32> to vector<128x128xi32>
    %77 = arith.cmpi eq, %76, %74 : vector<128x128xi32>
    %78 = arith.extui %77 : vector<128x128xi1> to vector<128x128xi32>
    %79 = arith.sitofp %78 : vector<128x128xi32> to vector<128x128xf32>
    %80 = vector.extract_strided_slice %0 {offsets = [1, 0], sizes = [1, 128], strides = [1, 1]} : vector<5x128xi32> to vector<1x128xi32>
    %81 = vector.broadcast %80 : vector<1x128xi32> to vector<128x128xi32>
    %82 = arith.cmpi eq, %81, %74 : vector<128x128xi32>
    %83 = arith.extui %82 : vector<128x128xi1> to vector<128x128xi32>
    %84 = arith.sitofp %83 : vector<128x128xi32> to vector<128x128xf32>
    %85 = arith.addf %79, %84 : vector<128x128xf32>
    %86 = vector.extract_strided_slice %0 {offsets = [2, 0], sizes = [1, 128], strides = [1, 1]} : vector<5x128xi32> to vector<1x128xi32>
    %87 = vector.broadcast %86 : vector<1x128xi32> to vector<128x128xi32>
    %88 = arith.cmpi eq, %87, %74 : vector<128x128xi32>
    %89 = arith.extui %88 : vector<128x128xi1> to vector<128x128xi32>
    %90 = arith.sitofp %89 : vector<128x128xi32> to vector<128x128xf32>
    %91 = arith.addf %85, %90 : vector<128x128xf32>
    %92 = vector.extract_strided_slice %0 {offsets = [3, 0], sizes = [1, 128], strides = [1, 1]} : vector<5x128xi32> to vector<1x128xi32>
    %93 = vector.broadcast %92 : vector<1x128xi32> to vector<128x128xi32>
    %94 = arith.cmpi eq, %93, %74 : vector<128x128xi32>
    %95 = arith.extui %94 : vector<128x128xi1> to vector<128x128xi32>
    %96 = arith.sitofp %95 : vector<128x128xi32> to vector<128x128xf32>
    %97 = arith.addf %91, %96 : vector<128x128xf32>
    %98 = vector.extract_strided_slice %0 {offsets = [4, 0], sizes = [1, 128], strides = [1, 1]} : vector<5x128xi32> to vector<1x128xi32>
    %99 = vector.broadcast %98 : vector<1x128xi32> to vector<128x128xi32>
    %100 = arith.cmpi eq, %99, %74 : vector<128x128xi32>
    %101 = arith.extui %100 : vector<128x128xi1> to vector<128x128xi32>
    %102 = arith.sitofp %101 : vector<128x128xi32> to vector<128x128xf32>
    %103 = arith.addf %97, %102 : vector<128x128xf32>
    %c0_6 = arith.constant 0 : index
    %c256 = arith.constant 256 : index
    %104 = vector.load %arg3[%c0_6, %c256] : memref<4x384xf32, #tpu.memory_space<vmem>>, vector<4x128xf32>
    %cst_7 = arith.constant dense<0.000000e+00> : vector<4x128xf32>
    %105 = tpu.matmul %104, %103, %cst_7 {dimension_numbers = #tpu.dot_dimension_numbers<[1], [0], [0], [1], [0, 0, 1, 1], [], []>} : vector<4x128xf32>, vector<128x128xf32>, vector<4x128xf32> -> vector<4x128xf32>
    %106 = arith.addf %71, %105 : vector<4x128xf32>
    %c0_8 = arith.constant 0 : index
    %c0_9 = arith.constant 0 : index
    %107 = vector.load %arg2[%c0_8, %c0_9] : memref<1x128xf32, #tpu.memory_space<vmem>>, vector<1x128xf32>
    %108 = vector.broadcast %107 : vector<1x128xf32> to vector<4x128xf32>
    %109 = arith.mulf %106, %108 : vector<4x128xf32>
    %c0_10 = arith.constant 0 : index
    %c0_11 = arith.constant 0 : index
    %110 = vector.load %arg4[%c0_10, %c0_11] : memref<4x128xf32, #tpu.memory_space<vmem>>, vector<4x128xf32>
    tpu.vector_store %arg4[%c0_10, %c0_11], %109 {strides = array<i32>} : memref<4x128xf32, #tpu.memory_space<vmem>>, vector<4x128xf32>,
    return
  }
  func.func @transform_0(%arg0: i32) -> (i32, i32) {
    %c0_i32 = arith.constant 0 : i32
    %c0_i32_0 = arith.constant 0 : i32
    return %c0_i32, %arg0 : i32, i32
  }
  func.func @transform_1(%arg0: i32) -> (i32, i32) {
    %c0_i32 = arith.constant 0 : i32
    %c0_i32_0 = arith.constant 0 : i32
    return %c0_i32, %arg0 : i32, i32
  }
  func.func @transform_2(%arg0: i32) -> (i32, i32) {
    %c0_i32 = arith.constant 0 : i32
    %c0_i32_0 = arith.constant 0 : i32
    %c0_i32_1 = arith.constant 0 : i32
    return %c0_i32, %c0_i32_0 : i32, i32
  }
  func.func @transform_3(%arg0: i32) -> (i32, i32) {
    %c0_i32 = arith.constant 0 : i32
    %c0_i32_0 = arith.constant 0 : i32
    return %c0_i32, %arg0 : i32, i32
  }
}

</mosaic_0001>

<bundles_post_ra>
// kernel: tpu_custom_call.1
= control target key start
LH: loop header
LB: loop body
LE: loop exit
PB: predicated region body
PF: predicated region fallthrough
CT: control target
= control target key end

     0   :  { %8 = vsyncpa [#allocation3], 0  ;;  %s2629_s0 = inlined_call_operand.hbm [shape: s32[5,128], index: 0, kind: input, shape index: {}]   ;;  %s2630_s1 = inlined_call_operand.vmem [shape: f32[1,128], index: 1, kind: input, shape index: {}]   ;;  %s2631_s2 = inlined_call_operand.hbm [shape: f32[4,384], index: 2, kind: input, shape index: {}]   ;;  %s2632_s3 = inlined_call_operand.hbm [shape: f32[4,128], index: 3, kind: output, shape index: {}]  }
   0x1   :  { %9 = vsyncpa [#allocation6], 0 }
   0x2   :  { %10 = vsyncpa [#allocation4], 0  ;;  %s1810_s12 = smov [#allocation2]   ;;  %s1811_s14 = smov [#allocation5]  }
   0x3   :  { %s17_s13 = sshll.u32 %s1810_s12, 4  ;;  %s29_s15 = sshll.u32 %s1811_s14, 4  ;;  %s18_s13 = int_to_ptr.vmem [resolvable:$true] %s17_s13  ;;  %s30_s15 = int_to_ptr.vmem [resolvable:$true] %s29_s15 }
   0x4   :  { %s1738_s18 = scalar_lea.hbm %s2629_s0, 128 }
   0x5   :  { %p1739_p0 = scmp.ne.s32.totalorder %s2629_s0, %s1738_s18  ;;  %p1742_p1 = scmp.lt.u32.totalorder %s1738_s18, %s2629_s0 }
   0x7   :  { %p1744_p2 = pnand %p1742_p1, %p1739_p0 }
   0x9   :  { %1747 = shalt.err (!%p1744_p2)
}
   0xa   :  { %s1748_s23 = scalar_lea.vmem %s18_s13, 128  ;;  %p1753_p4 = scmp.lt.s32.totalorder %s18_s13, %s18_s13 }
   0xb   :  { %p1749_p3 = scmp.ne.s32.totalorder %s18_s13, %s1748_s23  ;;  %p1754_p5 = scmp.lt.s32.totalorder %s1748_s23, %s1748_s23 }
   0xd   :  { %p1755_p6 = por %p1754_p5, %p1753_p4 }
   0xf   :  { %p1756_p7 = pnand %p1755_p6, %p1749_p3 }
  0x11   :  { %1759 = shalt.err (!%p1756_p7)
}
  0x12   :  { %20 = dma.hbm_to_vmem [thread:$0]  %s2629_s0, 128, %s18_s13, [#allocation3]  }
  0x13   :  { %s1760_s28 = scalar_lea.hbm %s2631_s2, 192 }
  0x14   :  { %p1761_p8 = scmp.ne.s32.totalorder %s2631_s2, %s1760_s28  ;;  %p1764_p9 = scmp.lt.u32.totalorder %s1760_s28, %s2631_s2 }
  0x16   :  { %p1766_p10 = pnand %p1764_p9, %p1761_p8 }
  0x18   :  { %1769 = shalt.err (!%p1766_p10)
}
  0x19   :  { %s1770_s6 = scalar_lea.vmem %s30_s15, 192  ;;  %p1775_p12 = scmp.lt.s32.totalorder %s30_s15, %s30_s15 }
  0x1a   :  { %p1771_p11 = scmp.ne.s32.totalorder %s30_s15, %s1770_s6  ;;  %p1776_p13 = scmp.lt.s32.totalorder %s1770_s6, %s1770_s6 }
  0x1c   :  { %p1777_p0 = por %p1776_p13, %p1775_p12 }
  0x1e   :  { %p1778_p1 = pnand %p1777_p0, %p1771_p11 }
  0x20   :  { %1781 = shalt.err (!%p1778_p1)
}
  0x21   :  { %32 = dma.hbm_to_vmem [thread:$0]  %s2631_s2, 192, %s30_s15, [#allocation6]  }
  0x22   :  { %1804 = dma.done.wait [#allocation3], 128  }
  0x23   :  { %1805 = vsyncadd [#allocation3], 4294967168 }
  0x24   :  { %1806 = dma.done.wait [#allocation6], 192  }
  0x25   :  { %1807 = vsyncadd [#allocation6], 4294967104  ;;  %v40_v0 = vlaneseq  ;;  %v1812_v1 = vmov 0.0|0.0   ;;  %vm1813_vm0 = vmmov 0   ;;  %v1814_v3 = vmov 0.0   ;;  %s1815_s9 = smov [#allocation7]  }
  0x26   :  { %1681 = vmatprep.subr.bf16.mxu0 %v1812_v1  ;;  %1657 = vmatprep.subr.bf16.mxu1 %v1812_v1  ;;  %v39_v16 = vld [vmem:[#allocation2] sm:$0x1f]  ;;  %s1250_s10 = sshll.u32 %s1815_s9, 4  ;;  %s1251_s10 = int_to_ptr.vmem [resolvable:$true] %s1250_s10 }
  0x27   :  { %v1862_v2 = vshrl.u32 %v40_v0, 7  ;;  %1619 = vmatprep.mubr.msk.f32.mxu0 %vm1813_vm0, %v1814_v3  ;;  %1584 = vmatprep.mubr.msk.f32.mxu1 %vm1813_vm0, %v1814_v3  ;;  %s1782_s11 = scalar_lea.vmem %s1251_s10, 64  ;;  %p1787_p3 = scmp.lt.s32.totalorder %s1251_s10, %s1251_s10 }
  0x28   :  { %p1783_p2 = scmp.ne.s32.totalorder %s1251_s10, %s1782_s11  ;;  %p1788_p4 = scmp.lt.s32.totalorder %s1782_s11, %s1782_s11 }
  0x29   :  { %v59_v4 = vsub.s32 0, %v1862_v2  ;;  %v111_v5 = vsub.s32 1, %v1862_v2  ;;  %v179_v6 = vsub.s32 2, %v1862_v2  ;;  %v247_v7 = vsub.s32 3, %v1862_v2 }
  0x2a   :  { %v315_v8 = vsub.s32 4, %v1862_v2  ;;  %v1874_v9 = vadd.s32 8, %v1862_v2  ;;  %v1877_v10 = vadd.s32 16, %v1862_v2  ;;  %v1880_v11 = vadd.s32 24, %v1862_v2  ;;  %p1789_p5 = por %p1788_p4, %p1787_p3 }
  0x2b   :  { %v1883_v12 = vadd.s32 32, %v1862_v2  ;;  %v1886_v13 = vadd.s32 40, %v1862_v2  ;;  %v1889_v14 = vadd.s32 48, %v1862_v2  ;;  %v1892_v15 = vadd.s32 56, %v1862_v2 }
  0x2c   :  { %v1895_v17 = vadd.s32 64, %v1862_v2  ;;  %v1898_v18 = vadd.s32 72, %v1862_v2  ;;  %v1901_v19 = vadd.s32 80, %v1862_v2  ;;  %v1904_v20 = vadd.s32 88, %v1862_v2  ;;  %p1790_p6 = pnand %p1789_p5, %p1783_p2 }
  0x2d   :  { %v1906_v21 = vrot.slane %v39_v16, %v59_v4  ;;  %v1908_v22 = vrot.slane %v39_v16, %v111_v5  ;;  %v1910_v23 = vrot.slane %v39_v16, %v179_v6  ;;  %v1912_v24 = vrot.slane %v39_v16, %v247_v7 }
  0x2e   :  { %v1914_v25 = vrot.slane %v39_v16, %v315_v8  ;;  %v1917_v26 = vadd.s32 96, %v1862_v2  ;;  %v1920_v27 = vadd.s32 104, %v1862_v2  ;;  %v1923_v28 = vadd.s32 112, %v1862_v2 }
  0x2f   :  { %vm61_vm1 = vcmp.eq.s32.totalorder %v1906_v21, %v1862_v2  ;;  %vm62_vm2 = vcmp.eq.s32.totalorder %v1906_v21, %v1874_v9  ;;  %vm113_vm3 = vcmp.eq.s32.totalorder %v1908_v22, %v1862_v2  ;;  %vm114_vm4 = vcmp.eq.s32.totalorder %v1908_v22, %v1874_v9 }
  0x30   :  { %v1260_v29 = vsel %vm61_vm1, 1.0, %v1814_v3  ;;  %v1261_v30 = vsel %vm62_vm2, 1.0, %v1814_v3  ;;  %v1276_v31 = vsel %vm113_vm3, 1.0, %v1814_v3  ;;  %v1277_v32 = vsel %vm114_vm4, 1.0, %v1814_v3 }
  0x31   :  { %v161_v33 = vadd.f32 %v1276_v31, %v1260_v29  ;;  %v162_v34 = vadd.f32 %v1277_v32, %v1261_v30  ;;  %vm181_vm5 = vcmp.eq.s32.totalorder %v1910_v23, %v1862_v2  ;;  %vm182_vm6 = vcmp.eq.s32.totalorder %v1910_v23, %v1874_v9 }
  0x32   :  { %v1292_v35 = vsel %vm181_vm5, 1.0, %v1814_v3  ;;  %v1293_v36 = vsel %vm182_vm6, 1.0, %v1814_v3  ;;  %vm249_vm7 = vcmp.eq.s32.totalorder %v1912_v24, %v1862_v2  ;;  %vm250_vm8 = vcmp.eq.s32.totalorder %v1912_v24, %v1874_v9 }
  0x33   :  { %v229_v37 = vadd.f32 %v1292_v35, %v161_v33  ;;  %v230_v38 = vadd.f32 %v1293_v36, %v162_v34  ;;  %v1308_v39 = vsel %vm249_vm7, 1.0, %v1814_v3  ;;  %v1309_v40 = vsel %vm250_vm8, 1.0, %v1814_v3 }
  0x34   :  { %vm317_vm9 = vcmp.eq.s32.totalorder %v1914_v25, %v1862_v2  ;;  %vm318_vm10 = vcmp.eq.s32.totalorder %v1914_v25, %v1874_v9  ;;  %vm63_vm11 = vcmp.eq.s32.totalorder %v1906_v21, %v1877_v10  ;;  %vm64_vm12 = vcmp.eq.s32.totalorder %v1906_v21, %v1880_v11 }
  0x35   :  { %v297_v41 = vadd.f32 %v1308_v39, %v229_v37  ;;  %v298_v42 = vadd.f32 %v1309_v40, %v230_v38  ;;  %v1324_v43 = vsel %vm317_vm9, 1.0, %v1814_v3  ;;  %v1325_v44 = vsel %vm318_vm10, 1.0, %v1814_v3 }
  0x36   :  { %v1262_v45 = vsel %vm63_vm11, 1.0, %v1814_v3  ;;  %v1263_v46 = vsel %vm64_vm12, 1.0, %v1814_v3  ;;  %vm115_vm13 = vcmp.eq.s32.totalorder %v1908_v22, %v1877_v10  ;;  %vm116_vm14 = vcmp.eq.s32.totalorder %v1908_v22, %v1880_v11 }
  0x37   :  { %v365_v47 = vadd.f32 %v1324_v43, %v297_v41  ;;  %v366_v48 = vadd.f32 %v1325_v44, %v298_v42  ;;  %v1278_v49 = vsel %vm115_vm13, 1.0, %v1814_v3  ;;  %v1279_v50 = vsel %vm116_vm14, 1.0, %v1814_v3 }
  0x38   :  { %v163_v51 = vadd.f32 %v1278_v49, %v1262_v45  ;;  %v164_v52 = vadd.f32 %v1279_v50, %v1263_v46  ;;  %vm183_vm15 = vcmp.eq.s32.totalorder %v1910_v23, %v1877_v10  ;;  %vm184_vm1 = vcmp.eq.s32.totalorder %v1910_v23, %v1880_v11 }
  0x39   :  { %v1682_v53 = vpack.c.bf16 %v366_v48, %v365_v47  ;;  %v1294_v54 = vsel %vm183_vm15, 1.0, %v1814_v3  ;;  %v1295_v55 = vsel %vm184_vm1, 1.0, %v1814_v3  ;;  %vm251_vm2 = vcmp.eq.s32.totalorder %v1912_v24, %v1877_v10 }
  0x3a   :  { %v231_v56 = vadd.f32 %v1294_v54, %v163_v51  ;;  %v232_v57 = vadd.f32 %v1295_v55, %v164_v52  ;;  %vm252_vm3 = vcmp.eq.s32.totalorder %v1912_v24, %v1880_v11  ;;  %v1310_v58 = vsel %vm251_vm2, 1.0, %v1814_v3 }
  0x3b   :  { %1683 = vmatpush3.bf16.msra.mxu0 %v1682_v53  ;;  %v1311_v59 = vsel %vm252_vm3, 1.0, %v1814_v3  ;;  %vm319_vm4 = vcmp.eq.s32.totalorder %v1914_v25, %v1877_v10  ;;  %vm320_vm5 = vcmp.eq.s32.totalorder %v1914_v25, %v1880_v11  ;;  %vm65_vm6 = vcmp.eq.s32.totalorder %v1906_v21, %v1883_v12 }
  0x3c   :  { %1684 = vmatprep.subr.bf16.mxu0 %v1812_v1  ;;  %v299_v60 = vadd.f32 %v1310_v58, %v231_v56  ;;  %v300_v61 = vadd.f32 %v1311_v59, %v232_v57  ;;  %v1326_v62 = vsel %vm319_vm4, 1.0, %v1814_v3  ;;  %v1327_v63 = vsel %vm320_vm5, 1.0, %v1814_v3 }
  0x3d   :  { %vm66_vm7 = vcmp.eq.s32.totalorder %v1906_v21, %v1886_v13  ;;  %v1264_v0 = vsel %vm65_vm6, 1.0, %v1814_v3  ;;  %vm117_vm8 = vcmp.eq.s32.totalorder %v1908_v22, %v1883_v12  ;;  %vm118_vm9 = vcmp.eq.s32.totalorder %v1908_v22, %v1886_v13 }
  0x3e   :  { %v367_v4 = vadd.f32 %v1326_v62, %v299_v60  ;;  %v368_v5 = vadd.f32 %v1327_v63, %v300_v61  ;;  %v1265_v6 = vsel %vm66_vm7, 1.0, %v1814_v3  ;;  %v1280_v7 = vsel %vm117_vm8, 1.0, %v1814_v3 }
  0x3f   :  { %v1281_v8 = vsel %vm118_vm9, 1.0, %v1814_v3  ;;  %v165_v16 = vadd.f32 %v1280_v7, %v1264_v0  ;;  %vm185_vm10 = vcmp.eq.s32.totalorder %v1910_v23, %v1883_v12  ;;  %vm186_vm11 = vcmp.eq.s32.totalorder %v1910_v23, %v1886_v13 }
  0x40   :  { %v1685_v29 = vpack.c.bf16 %v368_v5, %v367_v4  ;;  %v166_v30 = vadd.f32 %v1281_v8, %v1265_v6  ;;  %v1296_v31 = vsel %vm185_vm10, 1.0, %v1814_v3  ;;  %v1297_v32 = vsel %vm186_vm11, 1.0, %v1814_v3 }
  0x41   :  { %v233_v33 = vadd.f32 %v1296_v31, %v165_v16  ;;  %vm253_vm12 = vcmp.eq.s32.totalorder %v1912_v24, %v1883_v12  ;;  %vm254_vm13 = vcmp.eq.s32.totalorder %v1912_v24, %v1886_v13  ;;  %vm321_vm14 = vcmp.eq.s32.totalorder %v1914_v25, %v1883_v12 }
  0x42   :  { %1686 = vmatpush3.bf16.msra.mxu0 %v1685_v29  ;;  %v234_v34 = vadd.f32 %v1297_v32, %v166_v30  ;;  %v1312_v35 = vsel %vm253_vm12, 1.0, %v1814_v3  ;;  %v1313_v36 = vsel %vm254_vm13, 1.0, %v1814_v3  ;;  %vm322_vm15 = vcmp.eq.s32.totalorder %v1914_v25, %v1886_v13 }
  0x43   :  { %1687 = vmatprep.subr.bf16.mxu0 %v1812_v1  ;;  %v301_v37 = vadd.f32 %v1312_v35, %v233_v33  ;;  %v1328_v38 = vsel %vm321_vm14, 1.0, %v1814_v3  ;;  %v1329_v39 = vsel %vm322_vm15, 1.0, %v1814_v3  ;;  %vm67_vm1 = vcmp.eq.s32.totalorder %v1906_v21, %v1889_v14 }
  0x44   :  { %v302_v40 = vadd.f32 %v1313_v36, %v234_v34  ;;  %vm68_vm2 = vcmp.eq.s32.totalorder %v1906_v21, %v1892_v15  ;;  %v1266_v41 = vsel %vm67_vm1, 1.0, %v1814_v3  ;;  %vm119_vm3 = vcmp.eq.s32.totalorder %v1908_v22, %v1889_v14 }
  0x45   :  { %v369_v42 = vadd.f32 %v1328_v38, %v301_v37  ;;  %v1267_v43 = vsel %vm68_vm2, 1.0, %v1814_v3  ;;  %vm120_vm4 = vcmp.eq.s32.totalorder %v1908_v22, %v1892_v15  ;;  %v1282_v44 = vsel %vm119_vm3, 1.0, %v1814_v3 }
  0x46   :  { %v370_v45 = vadd.f32 %v1329_v39, %v302_v40  ;;  %v1283_v46 = vsel %vm120_vm4, 1.0, %v1814_v3  ;;  %v167_v47 = vadd.f32 %v1282_v44, %v1266_v41  ;;  %vm187_vm5 = vcmp.eq.s32.totalorder %v1910_v23, %v1889_v14 }
  0x47   :  { %v168_v48 = vadd.f32 %v1283_v46, %v1267_v43  ;;  %vm188_vm6 = vcmp.eq.s32.totalorder %v1910_v23, %v1892_v15  ;;  %v1298_v49 = vsel %vm187_vm5, 1.0, %v1814_v3  ;;  %vm255_vm7 = vcmp.eq.s32.totalorder %v1912_v24, %v1889_v14 }
  0x48   :  { %v1688_v50 = vpack.c.bf16 %v370_v45, %v369_v42  ;;  %v1299_v51 = vsel %vm188_vm6, 1.0, %v1814_v3  ;;  %v235_v52 = vadd.f32 %v1298_v49, %v167_v47  ;;  %vm256_vm8 = vcmp.eq.s32.totalorder %v1912_v24, %v1892_v15 }
  0x49   :  { %v236_v53 = vadd.f32 %v1299_v51, %v168_v48  ;;  %v1314_v54 = vsel %vm255_vm7, 1.0, %v1814_v3  ;;  %v1315_v55 = vsel %vm256_vm8, 1.0, %v1814_v3  ;;  %vm323_vm9 = vcmp.eq.s32.totalorder %v1914_v25, %v1889_v14 }
  0x4a   :  { %1689 = vmatpush3.bf16.msra.mxu0 %v1688_v50  ;;  %v303_v56 = vadd.f32 %v1314_v54, %v235_v52  ;;  %vm324_vm10 = vcmp.eq.s32.totalorder %v1914_v25, %v1892_v15  ;;  %v1330_v57 = vsel %vm323_vm9, 1.0, %v1814_v3  ;;  %vm69_vm11 = vcmp.eq.s32.totalorder %v1906_v21, %v1895_v17 }
  0x4b   :  { %1690 = vmatprep.subr.bf16.mxu0 %v1812_v1  ;;  %v304_v58 = vadd.f32 %v1315_v55, %v236_v53  ;;  %v1331_v59 = vsel %vm324_vm10, 1.0, %v1814_v3  ;;  %vm70_vm12 = vcmp.eq.s32.totalorder %v1906_v21, %v1898_v18  ;;  %v1268_v60 = vsel %vm69_vm11, 1.0, %v1814_v3 }
  0x4c   :  { %v371_v61 = vadd.f32 %v1330_v57, %v303_v56  ;;  %v1269_v62 = vsel %vm70_vm12, 1.0, %v1814_v3  ;;  %vm121_vm13 = vcmp.eq.s32.totalorder %v1908_v22, %v1895_v17  ;;  %vm122_vm14 = vcmp.eq.s32.totalorder %v1908_v22, %v1898_v18 }
  0x4d   :  { %v372_v63 = vadd.f32 %v1331_v59, %v304_v58  ;;  %v1284_v0 = vsel %vm121_vm13, 1.0, %v1814_v3  ;;  %v1285_v4 = vsel %vm122_vm14, 1.0, %v1814_v3  ;;  %vm189_vm15 = vcmp.eq.s32.totalorder %v1910_v23, %v1895_v17 }
  0x4e   :  { %v169_v5 = vadd.f32 %v1284_v0, %v1268_v60  ;;  %v170_v6 = vadd.f32 %v1285_v4, %v1269_v62  ;;  %vm190_vm1 = vcmp.eq.s32.totalorder %v1910_v23, %v1898_v18  ;;  %v1300_v7 = vsel %vm189_vm15, 1.0, %v1814_v3 }
  0x4f   :  { %v1691_v8 = vpack.c.bf16 %v372_v63, %v371_v61  ;;  %v1301_v16 = vsel %vm190_vm1, 1.0, %v1814_v3  ;;  %vm257_vm2 = vcmp.eq.s32.totalorder %v1912_v24, %v1895_v17  ;;  %vm258_vm3 = vcmp.eq.s32.totalorder %v1912_v24, %v1898_v18 }
  0x50   :  { %v237_v29 = vadd.f32 %v1300_v7, %v169_v5  ;;  %v238_v30 = vadd.f32 %v1301_v16, %v170_v6  ;;  %v1316_v31 = vsel %vm257_vm2, 1.0, %v1814_v3  ;;  %v1317_v32 = vsel %vm258_vm3, 1.0, %v1814_v3 }
  0x51   :  { %1692 = vmatpush3.bf16.msra.mxu0 %v1691_v8  ;;  %vm325_vm4 = vcmp.eq.s32.totalorder %v1914_v25, %v1895_v17  ;;  %vm326_vm5 = vcmp.eq.s32.totalorder %v1914_v25, %v1898_v18  ;;  %vm71_vm6 = vcmp.eq.s32.totalorder %v1906_v21, %v1901_v19  ;;  %vm72_vm7 = vcmp.eq.s32.totalorder %v1906_v21, %v1904_v20 }
  0x52   :  { %1693 = vmatprep.subr.bf16.mxu0 %v1812_v1  ;;  %v305_v33 = vadd.f32 %v1316_v31, %v237_v29  ;;  %v306_v34 = vadd.f32 %v1317_v32, %v238_v30  ;;  %v1332_v35 = vsel %vm325_vm4, 1.0, %v1814_v3  ;;  %v1333_v36 = vsel %vm326_vm5, 1.0, %v1814_v3 }
  0x53   :  { %v1270_v37 = vsel %vm71_vm6, 1.0, %v1814_v3  ;;  %v1271_v38 = vsel %vm72_vm7, 1.0, %v1814_v3  ;;  %vm123_vm8 = vcmp.eq.s32.totalorder %v1908_v22, %v1901_v19  ;;  %vm124_vm9 = vcmp.eq.s32.totalorder %v1908_v22, %v1904_v20 }
  0x54   :  { %v373_v39 = vadd.f32 %v1332_v35, %v305_v33  ;;  %v374_v40 = vadd.f32 %v1333_v36, %v306_v34  ;;  %v1286_v41 = vsel %vm123_vm8, 1.0, %v1814_v3  ;;  %v1287_v42 = vsel %vm124_vm9, 1.0, %v1814_v3 }
  0x55   :  { %v171_v43 = vadd.f32 %v1286_v41, %v1270_v37  ;;  %v172_v44 = vadd.f32 %v1287_v42, %v1271_v38  ;;  %vm191_vm10 = vcmp.eq.s32.totalorder %v1910_v23, %v1901_v19  ;;  %vm192_vm11 = vcmp.eq.s32.totalorder %v1910_v23, %v1904_v20 }
  0x56   :  { %v1694_v45 = vpack.c.bf16 %v374_v40, %v373_v39  ;;  %v1302_v46 = vsel %vm191_vm10, 1.0, %v1814_v3  ;;  %v1303_v47 = vsel %vm192_vm11, 1.0, %v1814_v3  ;;  %vm259_vm12 = vcmp.eq.s32.totalorder %v1912_v24, %v1901_v19 }
  0x57   :  { %v239_v48 = vadd.f32 %v1302_v46, %v171_v43  ;;  %v240_v49 = vadd.f32 %v1303_v47, %v172_v44  ;;  %vm260_vm13 = vcmp.eq.s32.totalorder %v1912_v24, %v1904_v20  ;;  %v1318_v50 = vsel %vm259_vm12, 1.0, %v1814_v3 }
  0x58   :  { %1695 = vmatpush3.bf16.msra.mxu0 %v1694_v45  ;;  %v1319_v51 = vsel %vm260_vm13, 1.0, %v1814_v3  ;;  %vm327_vm14 = vcmp.eq.s32.totalorder %v1914_v25, %v1901_v19  ;;  %vm328_vm15 = vcmp.eq.s32.totalorder %v1914_v25, %v1904_v20  ;;  %vm73_vm1 = vcmp.eq.s32.totalorder %v1906_v21, %v1917_v26 }
  0x59   :  { %1696 = vmatprep.subr.bf16.mxu0 %v1812_v1  ;;  %v307_v52 = vadd.f32 %v1318_v50, %v239_v48  ;;  %v308_v53 = vadd.f32 %v1319_v51, %v240_v49  ;;  %v1334_v54 = vsel %vm327_vm14, 1.0, %v1814_v3  ;;  %v1335_v55 = vsel %vm328_vm15, 1.0, %v1814_v3 }
  0x5a   :  { %vm74_vm2 = vcmp.eq.s32.totalorder %v1906_v21, %v1920_v27  ;;  %v1272_v56 = vsel %vm73_vm1, 1.0, %v1814_v3  ;;  %vm125_vm3 = vcmp.eq.s32.totalorder %v1908_v22, %v1917_v26  ;;  %vm126_vm4 = vcmp.eq.s32.totalorder %v1908_v22, %v1920_v27 }
  0x5b   :  { %v375_v57 = vadd.f32 %v1334_v54, %v307_v52  ;;  %v376_v58 = vadd.f32 %v1335_v55, %v308_v53  ;;  %v1273_v59 = vsel %vm74_vm2, 1.0, %v1814_v3  ;;  %v1288_v60 = vsel %vm125_vm3, 1.0, %v1814_v3 }
  0x5c   :  { %v1289_v61 = vsel %vm126_vm4, 1.0, %v1814_v3  ;;  %v173_v62 = vadd.f32 %v1288_v60, %v1272_v56  ;;  %vm193_vm5 = vcmp.eq.s32.totalorder %v1910_v23, %v1917_v26  ;;  %vm194_vm6 = vcmp.eq.s32.totalorder %v1910_v23, %v1920_v27 }
  0x5d   :  { %v1697_v63 = vpack.c.bf16 %v376_v58, %v375_v57  ;;  %v174_v0 = vadd.f32 %v1289_v61, %v1273_v59  ;;  %v1304_v4 = vsel %vm193_vm5, 1.0, %v1814_v3  ;;  %v1305_v5 = vsel %vm194_vm6, 1.0, %v1814_v3 }
  0x5e   :  { %v241_v6 = vadd.f32 %v1304_v4, %v173_v62  ;;  %vm261_vm7 = vcmp.eq.s32.totalorder %v1912_v24, %v1917_v26  ;;  %vm262_vm8 = vcmp.eq.s32.totalorder %v1912_v24, %v1920_v27  ;;  %vm329_vm9 = vcmp.eq.s32.totalorder %v1914_v25, %v1917_v26 }
  0x5f   :  { %1698 = vmatpush3.bf16.msra.mxu0 %v1697_v63  ;;  %v242_v7 = vadd.f32 %v1305_v5, %v174_v0  ;;  %v1320_v8 = vsel %vm261_vm7, 1.0, %v1814_v3  ;;  %v1321_v16 = vsel %vm262_vm8, 1.0, %v1814_v3  ;;  %vm330_vm10 = vcmp.eq.s32.totalorder %v1914_v25, %v1920_v27 }
  0x60   :  { %1699 = vmatprep.subr.bf16.mxu0 %v1812_v1  ;;  %v309_v29 = vadd.f32 %v1320_v8, %v241_v6  ;;  %v1336_v30 = vsel %vm329_vm9, 1.0, %v1814_v3  ;;  %v1337_v31 = vsel %vm330_vm10, 1.0, %v1814_v3  ;;  %v2142_v32 = vadd.s32 120, %v1862_v2 }
  0x61   :  { %v310_v33 = vadd.f32 %v1321_v16, %v242_v7  ;;  %vm75_vm11 = vcmp.eq.s32.totalorder %v1906_v21, %v1923_v28  ;;  %vm127_vm12 = vcmp.eq.s32.totalorder %v1908_v22, %v1923_v28  ;;  %vm195_vm13 = vcmp.eq.s32.totalorder %v1910_v23, %v1923_v28  ;;  %v381_v16 = vld [vmem:[#allocation5] sm:$0xf] }
  0x62   :  { %v377_v34 = vadd.f32 %v1336_v30, %v309_v29  ;;  %vm76_vm14 = vcmp.eq.s32.totalorder %v1906_v21, %v2142_v32  ;;  %v1274_v35 = vsel %vm75_vm11, 1.0, %v1814_v3  ;;  %vm128_vm15 = vcmp.eq.s32.totalorder %v1908_v22, %v2142_v32 }
  0x63   :  { %v378_v36 = vadd.f32 %v1337_v31, %v310_v33  ;;  %v1275_v37 = vsel %vm76_vm14, 1.0, %v1814_v3  ;;  %v1290_v38 = vsel %vm127_vm12, 1.0, %v1814_v3  ;;  %v1291_v39 = vsel %vm128_vm15, 1.0, %v1814_v3 }
  0x64   :  { %v175_v40 = vadd.f32 %v1290_v38, %v1274_v35  ;;  %v176_v41 = vadd.f32 %v1291_v39, %v1275_v37  ;;  %vm196_vm1 = vcmp.eq.s32.totalorder %v1910_v23, %v2142_v32  ;;  %v1306_v42 = vsel %vm195_vm13, 1.0, %v1814_v3 }
  0x65   :  { %v1700_v43 = vpack.c.bf16 %v378_v36, %v377_v34  ;;  %v1307_v44 = vsel %vm196_vm1, 1.0, %v1814_v3  ;;  %vm263_vm2 = vcmp.eq.s32.totalorder %v1912_v24, %v1923_v28  ;;  %vm264_vm3 = vcmp.eq.s32.totalorder %v1912_v24, %v2142_v32 }
  0x66   :  { %v243_v45 = vadd.f32 %v1306_v42, %v175_v40  ;;  %v244_v46 = vadd.f32 %v1307_v44, %v176_v41  ;;  %v1322_v47 = vsel %vm263_vm2, 1.0, %v1814_v3  ;;  %v1323_v48 = vsel %vm264_vm3, 1.0, %v1814_v3 }
  0x67   :  { %1701 = vmatpush3.bf16.msra.mxu0 %v1700_v43  ;;  %vm331_vm4 = vcmp.eq.s32.totalorder %v1914_v25, %v1923_v28  ;;  %vm332_vm5 = vcmp.eq.s32.totalorder %v1914_v25, %v2142_v32  ;;  %v382_v49 = vadd.s32 128, %v1862_v2  ;;  %v383_v50 = vadd.s32 128, %v1874_v9 }
  0x68   :  { %1702 = vmatprep.subr.bf16.mxu0 %v1812_v1  ;;  %v311_v51 = vadd.f32 %v1322_v47, %v243_v45  ;;  %v312_v52 = vadd.f32 %v1323_v48, %v244_v46  ;;  %v1338_v53 = vsel %vm331_vm4, 1.0, %v1814_v3  ;;  %v1339_v54 = vsel %vm332_vm5, 1.0, %v1814_v3 }
  0x69   :  { %vm398_vm6 = vcmp.eq.s32.totalorder %v1906_v21, %v382_v49  ;;  %vm399_vm7 = vcmp.eq.s32.totalorder %v1906_v21, %v383_v50  ;;  %vm446_vm8 = vcmp.eq.s32.totalorder %v1908_v22, %v382_v49  ;;  %vm447_vm9 = vcmp.eq.s32.totalorder %v1908_v22, %v383_v50 }
  0x6a   :  { %v379_v55 = vadd.f32 %v1338_v53, %v311_v51  ;;  %v380_v56 = vadd.f32 %v1339_v54, %v312_v52  ;;  %v1340_v57 = vsel %vm398_vm6, 1.0, %v1814_v3  ;;  %v1341_v58 = vsel %vm399_vm7, 1.0, %v1814_v3 }
  0x6b   :  { %v1356_v59 = vsel %vm446_vm8, 1.0, %v1814_v3  ;;  %v1357_v60 = vsel %vm447_vm9, 1.0, %v1814_v3  ;;  %vm510_vm10 = vcmp.eq.s32.totalorder %v1910_v23, %v382_v49  ;;  %vm511_vm11 = vcmp.eq.s32.totalorder %v1910_v23, %v383_v50 }
  0x6c   :  { %v1703_v61 = vpack.c.bf16 %v380_v56, %v379_v55  ;;  %v494_v62 = vadd.f32 %v1356_v59, %v1340_v57  ;;  %v495_v63 = vadd.f32 %v1357_v60, %v1341_v58  ;;  %v1372_v0 = vsel %vm510_vm10, 1.0, %v1814_v3 }
  0x6d   :  { %v1373_v4 = vsel %vm511_vm11, 1.0, %v1814_v3  ;;  %vm574_vm12 = vcmp.eq.s32.totalorder %v1912_v24, %v382_v49  ;;  %vm575_vm13 = vcmp.eq.s32.totalorder %v1912_v24, %v383_v50  ;;  %vm638_vm14 = vcmp.eq.s32.totalorder %v1914_v25, %v382_v49 }
  0x6e   :  { %1704 = vmatpush3.bf16.msra.mxu0 %v1703_v61  ;;  %v558_v5 = vadd.f32 %v1372_v0, %v494_v62  ;;  %v559_v6 = vadd.f32 %v1373_v4, %v495_v63  ;;  %v1388_v7 = vsel %vm574_vm12, 1.0, %v1814_v3  ;;  %v1389_v8 = vsel %vm575_vm13, 1.0, %v1814_v3 }
  0x6f   :  { %vm639_vm15 = vcmp.eq.s32.totalorder %v1914_v25, %v383_v50  ;;  %v1404_v29 = vsel %vm638_vm14, 1.0, %v1814_v3  ;;  %1705 = vmatprep.subr.bf16.mxu0 %v1812_v1  ;;  %v843_v30 = vadd.s32 256, %v1862_v2  ;;  %v844_v31 = vadd.s32 256, %v1874_v9 }
  0x70   :  { %v622_v33 = vadd.f32 %v1388_v7, %v558_v5  ;;  %v623_v34 = vadd.f32 %v1389_v8, %v559_v6  ;;  %v1405_v35 = vsel %vm639_vm15, 1.0, %v1814_v3  ;;  %v384_v36 = vadd.s32 128, %v1877_v10 }
  0x71   :  { %1620 = vmatmul.mubr.f32.vlgmr.msra.gmra.mrb[0].mxu0 %v381_v16  ;;  %vm859_vm1 = vcmp.eq.s32.totalorder %v1906_v21, %v843_v30  ;;  %vm860_vm2 = vcmp.eq.s32.totalorder %v1906_v21, %v844_v31  ;;  %vm907_vm3 = vcmp.eq.s32.totalorder %v1908_v22, %v843_v30  ;;  %vm908_vm4 = vcmp.eq.s32.totalorder %v1908_v22, %v844_v31 }
  0x72   :  { %v686_v37 = vadd.f32 %v1404_v29, %v622_v33  ;;  %v687_v38 = vadd.f32 %v1405_v35, %v623_v34  ;;  %v1420_v2 = vsel %vm859_vm1, 1.0, %v1814_v3  ;;  %v1421_v9 = vsel %vm860_vm2, 1.0, %v1814_v3  ;;  %1654 = vmatprep.mubr.msk.f32.mxu0 %vm1813_vm0, %v1814_v3 }
  0x73   :  { %v1436_v39 = vsel %vm907_vm3, 1.0, %v1814_v3  ;;  %v1437_v40 = vsel %vm908_vm4, 1.0, %v1814_v3  ;;  %vm971_vm5 = vcmp.eq.s32.totalorder %v1910_v23, %v843_v30  ;;  %vm972_vm6 = vcmp.eq.s32.totalorder %v1910_v23, %v844_v31 }
  0x74   :  { %v1658_v41 = vpack.c.bf16 %v687_v38, %v686_v37  ;;  %v955_v42 = vadd.f32 %v1436_v39, %v1420_v2  ;;  %v956_v43 = vadd.f32 %v1437_v40, %v1421_v9  ;;  %v1452_v44 = vsel %vm971_vm5, 1.0, %v1814_v3 }
  0x75   :  { %v1453_v45 = vsel %vm972_vm6, 1.0, %v1814_v3  ;;  %vm1035_vm7 = vcmp.eq.s32.totalorder %v1912_v24, %v843_v30  ;;  %vm1036_vm8 = vcmp.eq.s32.totalorder %v1912_v24, %v844_v31  ;;  %vm1099_vm0 = vcmp.eq.s32.totalorder %v1914_v25, %v843_v30 }
  0x76   :  { %1659 = vmatpush3.bf16.msra.mxu1 %v1658_v41  ;;  %v1019_v46 = vadd.f32 %v1452_v44, %v955_v42  ;;  %v1020_v47 = vadd.f32 %v1453_v45, %v956_v43  ;;  %v1468_v48 = vsel %vm1035_vm7, 1.0, %v1814_v3  ;;  %v1469_v49 = vsel %vm1036_vm8, 1.0, %v1814_v3 }
  0x77   :  { %vm1100_vm9 = vcmp.eq.s32.totalorder %v1914_v25, %v844_v31  ;;  %v1484_v50 = vsel %vm1099_vm0, 1.0, %v1814_v3  ;;  %1660 = vmatprep.subr.bf16.mxu1 %v1812_v1  ;;  %v385_v51 = vadd.s32 128, %v1880_v11  ;;  %vm400_vm10 = vcmp.eq.s32.totalorder %v1906_v21, %v384_v36 }
  0x78   :  { %v1083_v52 = vadd.f32 %v1468_v48, %v1019_v46  ;;  %v1084_v53 = vadd.f32 %v1469_v49, %v1020_v47  ;;  %v1485_v54 = vsel %vm1100_vm9, 1.0, %v1814_v3  ;;  %v1342_v55 = vsel %vm400_vm10, 1.0, %v1814_v3 }
  0x79   :  { %vm401_vm11 = vcmp.eq.s32.totalorder %v1906_v21, %v385_v51  ;;  %vm448_vm12 = vcmp.eq.s32.totalorder %v1908_v22, %v384_v36  ;;  %vm449_vm13 = vcmp.eq.s32.totalorder %v1908_v22, %v385_v51  ;;  %vm512_vm14 = vcmp.eq.s32.totalorder %v1910_v23, %v384_v36 }
  0x7a   :  { %v1147_v56 = vadd.f32 %v1484_v50, %v1083_v52  ;;  %v1148_v57 = vadd.f32 %v1485_v54, %v1084_v53  ;;  %v1343_v58 = vsel %vm401_vm11, 1.0, %v1814_v3  ;;  %v1358_v59 = vsel %vm448_vm12, 1.0, %v1814_v3 }
  0x7b   :  { %v1359_v60 = vsel %vm449_vm13, 1.0, %v1814_v3  ;;  %v496_v61 = vadd.f32 %v1358_v59, %v1342_v55  ;;  %vm513_vm15 = vcmp.eq.s32.totalorder %v1910_v23, %v385_v51  ;;  %v1374_v62 = vsel %vm512_vm14, 1.0, %v1814_v3 }
  0x7c   :  { %v1706_v63 = vpack.c.bf16 %v1148_v57, %v1147_v56  ;;  %v497_v0 = vadd.f32 %v1359_v60, %v1343_v58  ;;  %v1375_v4 = vsel %vm513_vm15, 1.0, %v1814_v3  ;;  %vm576_vm1 = vcmp.eq.s32.totalorder %v1912_v24, %v384_v36 }
  0x7d   :  { %v560_v5 = vadd.f32 %v1374_v62, %v496_v61  ;;  %vm577_vm2 = vcmp.eq.s32.totalorder %v1912_v24, %v385_v51  ;;  %v1390_v6 = vsel %vm576_vm1, 1.0, %v1814_v3  ;;  %vm640_vm3 = vcmp.eq.s32.totalorder %v1914_v25, %v384_v36 }
  0x7e   :  { %1707 = vmatpush3.bf16.msra.mxu0 %v1706_v63  ;;  %v561_v7 = vadd.f32 %v1375_v4, %v497_v0  ;;  %v1391_v8 = vsel %vm577_vm2, 1.0, %v1814_v3  ;;  %vm641_vm4 = vcmp.eq.s32.totalorder %v1914_v25, %v385_v51  ;;  %v1406_v16 = vsel %vm640_vm3, 1.0, %v1814_v3 }
  0x7f   :  { %v624_v29 = vadd.f32 %v1390_v6, %v560_v5  ;;  %v1407_v30 = vsel %vm641_vm4, 1.0, %v1814_v3  ;;  %1708 = vmatprep.subr.bf16.mxu0 %v1812_v1  ;;  %v845_v31 = vadd.s32 256, %v1877_v10  ;;  %v846_v33 = vadd.s32 256, %v1880_v11 }
  0x80   :  { %v625_v34 = vadd.f32 %v1391_v8, %v561_v7  ;;  %v2249_v35 = vadd.s32 128, %v1883_v12  ;;  %v2252_v36 = vadd.s32 128, %v1886_v13  ;;  %v2255_v37 = vadd.s32 256, %v1883_v12 }
  0x81   :  { %v688_v38 = vadd.f32 %v1406_v16, %v624_v29  ;;  %vm861_vm5 = vcmp.eq.s32.totalorder %v1906_v21, %v845_v31  ;;  %vm862_vm6 = vcmp.eq.s32.totalorder %v1906_v21, %v846_v33  ;;  %vm909_vm7 = vcmp.eq.s32.totalorder %v1908_v22, %v845_v31 }
  0x82   :  { %v689_v10 = vadd.f32 %v1407_v30, %v625_v34  ;;  %v1422_v11 = vsel %vm861_vm5, 1.0, %v1814_v3  ;;  %v1423_v2 = vsel %vm862_vm6, 1.0, %v1814_v3  ;;  %vm910_vm8 = vcmp.eq.s32.totalorder %v1908_v22, %v846_v33 }
  0x83   :  { %v1438_v9 = vsel %vm909_vm7, 1.0, %v1814_v3  ;;  %v1439_v39 = vsel %vm910_vm8, 1.0, %v1814_v3  ;;  %vm973_vm0 = vcmp.eq.s32.totalorder %v1910_v23, %v845_v31  ;;  %vm974_vm9 = vcmp.eq.s32.totalorder %v1910_v23, %v846_v33 }
  0x84   :  { %v1661_v12 = vpack.c.bf16 %v689_v10, %v688_v38  ;;  %v957_v40 = vadd.f32 %v1438_v9, %v1422_v11  ;;  %v958_v41 = vadd.f32 %v1439_v39, %v1423_v2  ;;  %v1454_v42 = vsel %vm973_vm0, 1.0, %v1814_v3 }
  0x85   :  { %v1455_v43 = vsel %vm974_vm9, 1.0, %v1814_v3  ;;  %vm1037_vm10 = vcmp.eq.s32.totalorder %v1912_v24, %v845_v31  ;;  %vm1038_vm11 = vcmp.eq.s32.totalorder %v1912_v24, %v846_v33  ;;  %vm1101_vm12 = vcmp.eq.s32.totalorder %v1914_v25, %v845_v31 }
  0x86   :  { %1662 = vmatpush3.bf16.msra.mxu1 %v1661_v12  ;;  %v1021_v44 = vadd.f32 %v1454_v42, %v957_v40  ;;  %v1022_v45 = vadd.f32 %v1455_v43, %v958_v41  ;;  %v1470_v46 = vsel %vm1037_vm10, 1.0, %v1814_v3  ;;  %v1471_v47 = vsel %vm1038_vm11, 1.0, %v1814_v3 }
  0x87   :  { %vm1102_vm13 = vcmp.eq.s32.totalorder %v1914_v25, %v846_v33  ;;  %v1486_v48 = vsel %vm1101_vm12, 1.0, %v1814_v3  ;;  %1663 = vmatprep.subr.bf16.mxu1 %v1812_v1  ;;  %vm402_vm14 = vcmp.eq.s32.totalorder %v1906_v21, %v2249_v35  ;;  %vm403_vm15 = vcmp.eq.s32.totalorder %v1906_v21, %v2252_v36 }
  0x88   :  { %v1085_v49 = vadd.f32 %v1470_v46, %v1021_v44  ;;  %v1086_v50 = vadd.f32 %v1471_v47, %v1022_v45  ;;  %v1487_v51 = vsel %vm1102_vm13, 1.0, %v1814_v3  ;;  %v1344_v52 = vsel %vm402_vm14, 1.0, %v1814_v3 }
  0x89   :  { %v1345_v53 = vsel %vm403_vm15, 1.0, %v1814_v3  ;;  %vm450_vm1 = vcmp.eq.s32.totalorder %v1908_v22, %v2249_v35  ;;  %vm451_vm2 = vcmp.eq.s32.totalorder %v1908_v22, %v2252_v36  ;;  %vm514_vm3 = vcmp.eq.s32.totalorder %v1910_v23, %v2249_v35 }
  0x8a   :  { %v1149_v54 = vadd.f32 %v1486_v48, %v1085_v49  ;;  %v1150_v55 = vadd.f32 %v1487_v51, %v1086_v50  ;;  %v1360_v56 = vsel %vm450_vm1, 1.0, %v1814_v3  ;;  %v1361_v57 = vsel %vm451_vm2, 1.0, %v1814_v3 }
  0x8b   :  { %v498_v58 = vadd.f32 %v1360_v56, %v1344_v52  ;;  %v499_v59 = vadd.f32 %v1361_v57, %v1345_v53  ;;  %vm515_vm4 = vcmp.eq.s32.totalorder %v1910_v23, %v2252_v36  ;;  %v1376_v60 = vsel %vm514_vm3, 1.0, %v1814_v3 }
  0x8c   :  { %v1709_v61 = vpack.c.bf16 %v1150_v55, %v1149_v54  ;;  %v1377_v62 = vsel %vm515_vm4, 1.0, %v1814_v3  ;;  %vm578_vm5 = vcmp.eq.s32.totalorder %v1912_v24, %v2249_v35  ;;  %vm579_vm6 = vcmp.eq.s32.totalorder %v1912_v24, %v2252_v36 }
  0x8d   :  { %v562_v63 = vadd.f32 %v1376_v60, %v498_v58  ;;  %v563_v0 = vadd.f32 %v1377_v62, %v499_v59  ;;  %v1392_v4 = vsel %vm578_vm5, 1.0, %v1814_v3  ;;  %v1393_v5 = vsel %vm579_vm6, 1.0, %v1814_v3 }
  0x8e   :  { %1710 = vmatpush3.bf16.msra.mxu0 %v1709_v61  ;;  %vm642_vm7 = vcmp.eq.s32.totalorder %v1914_v25, %v2249_v35  ;;  %vm643_vm8 = vcmp.eq.s32.totalorder %v1914_v25, %v2252_v36  ;;  %v848_v6 = vadd.s32 256, %v1886_v13  ;;  %vm863_vm0 = vcmp.eq.s32.totalorder %v1906_v21, %v2255_v37 }
  0x8f   :  { %v626_v7 = vadd.f32 %v1392_v4, %v562_v63  ;;  %v627_v8 = vadd.f32 %v1393_v5, %v563_v0  ;;  %v1408_v16 = vsel %vm642_vm7, 1.0, %v1814_v3  ;;  %v1409_v29 = vsel %vm643_vm8, 1.0, %v1814_v3  ;;  %1711 = vmatprep.subr.bf16.mxu0 %v1812_v1 }
  0x90   :  { %vm864_vm9 = vcmp.eq.s32.totalorder %v1906_v21, %v848_v6  ;;  %v1424_v30 = vsel %vm863_vm0, 1.0, %v1814_v3  ;;  %vm911_vm10 = vcmp.eq.s32.totalorder %v1908_v22, %v2255_v37  ;;  %vm912_vm11 = vcmp.eq.s32.totalorder %v1908_v22, %v848_v6 }
  0x91   :  { %v690_v13 = vadd.f32 %v1408_v16, %v626_v7  ;;  %v691_v31 = vadd.f32 %v1409_v29, %v627_v8  ;;  %v1425_v33 = vsel %vm864_vm9, 1.0, %v1814_v3  ;;  %v1440_v34 = vsel %vm911_vm10, 1.0, %v1814_v3 }
  0x92   :  { %v1441_v35 = vsel %vm912_vm11, 1.0, %v1814_v3  ;;  %v959_v36 = vadd.f32 %v1440_v34, %v1424_v30  ;;  %vm975_vm12 = vcmp.eq.s32.totalorder %v1910_v23, %v2255_v37  ;;  %vm976_vm13 = vcmp.eq.s32.totalorder %v1910_v23, %v848_v6 }
  0x93   :  { %v1664_v38 = vpack.c.bf16 %v691_v31, %v690_v13  ;;  %v960_v10 = vadd.f32 %v1441_v35, %v1425_v33  ;;  %v1456_v11 = vsel %vm975_vm12, 1.0, %v1814_v3  ;;  %v1457_v2 = vsel %vm976_vm13, 1.0, %v1814_v3 }
  0x94   :  { %v1023_v9 = vadd.f32 %v1456_v11, %v959_v36  ;;  %vm1039_vm14 = vcmp.eq.s32.totalorder %v1912_v24, %v2255_v37  ;;  %vm1040_vm15 = vcmp.eq.s32.totalorder %v1912_v24, %v848_v6  ;;  %vm1103_vm1 = vcmp.eq.s32.totalorder %v1914_v25, %v2255_v37 }
  0x95   :  { %1665 = vmatpush3.bf16.msra.mxu1 %v1664_v38  ;;  %v1024_v39 = vadd.f32 %v1457_v2, %v960_v10  ;;  %v1472_v12 = vsel %vm1039_vm14, 1.0, %v1814_v3  ;;  %v1473_v40 = vsel %vm1040_vm15, 1.0, %v1814_v3  ;;  %vm1104_vm2 = vcmp.eq.s32.totalorder %v1914_v25, %v848_v6 }
  0x96   :  { %v1087_v41 = vadd.f32 %v1472_v12, %v1023_v9  ;;  %v1488_v42 = vsel %vm1103_vm1, 1.0, %v1814_v3  ;;  %v1489_v43 = vsel %vm1104_vm2, 1.0, %v1814_v3  ;;  %1666 = vmatprep.subr.bf16.mxu1 %v1812_v1  ;;  %v388_v44 = vadd.s32 128, %v1889_v14 }
  0x97   :  { %v1088_v45 = vadd.f32 %v1473_v40, %v1024_v39  ;;  %v389_v37 = vadd.s32 128, %v1892_v15  ;;  %v2339_v46 = vadd.s32 256, %v1889_v14  ;;  %v2342_v47 = vadd.s32 256, %v1892_v15 }
  0x98   :  { %v1151_v48 = vadd.f32 %v1488_v42, %v1087_v41  ;;  %vm404_vm3 = vcmp.eq.s32.totalorder %v1906_v21, %v388_v44  ;;  %vm452_vm4 = vcmp.eq.s32.totalorder %v1908_v22, %v388_v44  ;;  %vm516_vm5 = vcmp.eq.s32.totalorder %v1910_v23, %v388_v44 }
  0x99   :  { %v1152_v49 = vadd.f32 %v1489_v43, %v1088_v45  ;;  %vm405_vm6 = vcmp.eq.s32.totalorder %v1906_v21, %v389_v37  ;;  %v1346_v50 = vsel %vm404_vm3, 1.0, %v1814_v3  ;;  %vm453_vm7 = vcmp.eq.s32.totalorder %v1908_v22, %v389_v37 }
  0x9a   :  { %v1347_v14 = vsel %vm405_vm6, 1.0, %v1814_v3  ;;  %v1362_v51 = vsel %vm452_vm4, 1.0, %v1814_v3  ;;  %v1363_v15 = vsel %vm453_vm7, 1.0, %v1814_v3  ;;  %vm517_vm8 = vcmp.eq.s32.totalorder %v1910_v23, %v389_v37 }
  0x9b   :  { %v1712_v52 = vpack.c.bf16 %v1152_v49, %v1151_v48  ;;  %v500_v53 = vadd.f32 %v1362_v51, %v1346_v50  ;;  %v501_v54 = vadd.f32 %v1363_v15, %v1347_v14  ;;  %v1378_v55 = vsel %vm516_vm5, 1.0, %v1814_v3 }
  0x9c   :  { %v1379_v56 = vsel %vm517_vm8, 1.0, %v1814_v3  ;;  %vm580_vm0 = vcmp.eq.s32.totalorder %v1912_v24, %v388_v44  ;;  %vm581_vm9 = vcmp.eq.s32.totalorder %v1912_v24, %v389_v37  ;;  %vm644_vm10 = vcmp.eq.s32.totalorder %v1914_v25, %v388_v44 }
  0x9d   :  { %1713 = vmatpush3.bf16.msra.mxu0 %v1712_v52  ;;  %v564_v57 = vadd.f32 %v1378_v55, %v500_v53  ;;  %v565_v58 = vadd.f32 %v1379_v56, %v501_v54  ;;  %v1394_v59 = vsel %vm580_vm0, 1.0, %v1814_v3  ;;  %v1395_v60 = vsel %vm581_vm9, 1.0, %v1814_v3 }
  0x9e   :  { %vm645_vm11 = vcmp.eq.s32.totalorder %v1914_v25, %v389_v37  ;;  %v1410_v61 = vsel %vm644_vm10, 1.0, %v1814_v3  ;;  %1714 = vmatprep.subr.bf16.mxu0 %v1812_v1  ;;  %vm865_vm12 = vcmp.eq.s32.totalorder %v1906_v21, %v2339_v46  ;;  %vm866_vm13 = vcmp.eq.s32.totalorder %v1906_v21, %v2342_v47 }
  0x9f   :  { %v628_v62 = vadd.f32 %v1394_v59, %v564_v57  ;;  %v629_v63 = vadd.f32 %v1395_v60, %v565_v58  ;;  %v1411_v0 = vsel %vm645_vm11, 1.0, %v1814_v3  ;;  %v1426_v4 = vsel %vm865_vm12, 1.0, %v1814_v3 }
  0xa0   :  { %v1427_v5 = vsel %vm866_vm13, 1.0, %v1814_v3  ;;  %vm913_vm14 = vcmp.eq.s32.totalorder %v1908_v22, %v2339_v46  ;;  %vm914_vm15 = vcmp.eq.s32.totalorder %v1908_v22, %v2342_v47  ;;  %vm977_vm1 = vcmp.eq.s32.totalorder %v1910_v23, %v2339_v46 }
  0xa1   :  { %v692_v6 = vadd.f32 %v1410_v61, %v628_v62  ;;  %v693_v7 = vadd.f32 %v1411_v0, %v629_v63  ;;  %v1442_v8 = vsel %vm913_vm14, 1.0, %v1814_v3  ;;  %v1443_v16 = vsel %vm914_vm15, 1.0, %v1814_v3 }
  0xa2   :  { %v961_v29 = vadd.f32 %v1442_v8, %v1426_v4  ;;  %v962_v30 = vadd.f32 %v1443_v16, %v1427_v5  ;;  %vm978_vm2 = vcmp.eq.s32.totalorder %v1910_v23, %v2342_v47  ;;  %v1458_v13 = vsel %vm977_vm1, 1.0, %v1814_v3 }
  0xa3   :  { %v1667_v31 = vpack.c.bf16 %v693_v7, %v692_v6  ;;  %v1459_v33 = vsel %vm978_vm2, 1.0, %v1814_v3  ;;  %vm1041_vm3 = vcmp.eq.s32.totalorder %v1912_v24, %v2339_v46  ;;  %vm1042_vm4 = vcmp.eq.s32.totalorder %v1912_v24, %v2342_v47 }
  0xa4   :  { %v1025_v34 = vadd.f32 %v1458_v13, %v961_v29  ;;  %v1026_v35 = vadd.f32 %v1459_v33, %v962_v30  ;;  %v1474_v36 = vsel %vm1041_vm3, 1.0, %v1814_v3  ;;  %v1475_v38 = vsel %vm1042_vm4, 1.0, %v1814_v3 }
  0xa5   :  { %1668 = vmatpush3.bf16.msra.mxu1 %v1667_v31  ;;  %vm1105_vm5 = vcmp.eq.s32.totalorder %v1914_v25, %v2339_v46  ;;  %vm1106_vm6 = vcmp.eq.s32.totalorder %v1914_v25, %v2342_v47  ;;  %v390_v10 = vadd.s32 128, %v1895_v17  ;;  %v391_v11 = vadd.s32 128, %v1898_v18 }
  0xa6   :  { %v1089_v2 = vadd.f32 %v1474_v36, %v1025_v34  ;;  %v1090_v9 = vadd.f32 %v1475_v38, %v1026_v35  ;;  %v1490_v39 = vsel %vm1105_vm5, 1.0, %v1814_v3  ;;  %v1491_v12 = vsel %vm1106_vm6, 1.0, %v1814_v3  ;;  %1669 = vmatprep.subr.bf16.mxu1 %v1812_v1 }
  0xa7   :  { %vm406_vm7 = vcmp.eq.s32.totalorder %v1906_v21, %v390_v10  ;;  %vm407_vm8 = vcmp.eq.s32.totalorder %v1906_v21, %v391_v11  ;;  %vm454_vm0 = vcmp.eq.s32.totalorder %v1908_v22, %v390_v10  ;;  %vm455_vm9 = vcmp.eq.s32.totalorder %v1908_v22, %v391_v11 }
  0xa8   :  { %v1153_v40 = vadd.f32 %v1490_v39, %v1089_v2  ;;  %v1154_v41 = vadd.f32 %v1491_v12, %v1090_v9  ;;  %v1348_v42 = vsel %vm406_vm7, 1.0, %v1814_v3  ;;  %v1349_v43 = vsel %vm407_vm8, 1.0, %v1814_v3 }
  0xa9   :  { %v1364_v44 = vsel %vm454_vm0, 1.0, %v1814_v3  ;;  %v1365_v45 = vsel %vm455_vm9, 1.0, %v1814_v3  ;;  %vm518_vm10 = vcmp.eq.s32.totalorder %v1910_v23, %v390_v10  ;;  %vm519_vm11 = vcmp.eq.s32.totalorder %v1910_v23, %v391_v11 }
  0xaa   :  { %v1715_v37 = vpack.c.bf16 %v1154_v41, %v1153_v40  ;;  %v502_v46 = vadd.f32 %v1364_v44, %v1348_v42  ;;  %v503_v47 = vadd.f32 %v1365_v45, %v1349_v43  ;;  %v1380_v48 = vsel %vm518_vm10, 1.0, %v1814_v3 }
  0xab   :  { %v1381_v49 = vsel %vm519_vm11, 1.0, %v1814_v3  ;;  %vm582_vm12 = vcmp.eq.s32.totalorder %v1912_v24, %v390_v10  ;;  %vm583_vm13 = vcmp.eq.s32.totalorder %v1912_v24, %v391_v11  ;;  %vm646_vm14 = vcmp.eq.s32.totalorder %v1914_v25, %v390_v10 }
  0xac   :  { %1716 = vmatpush3.bf16.msra.mxu0 %v1715_v37  ;;  %v566_v50 = vadd.f32 %v1380_v48, %v502_v46  ;;  %v567_v14 = vadd.f32 %v1381_v49, %v503_v47  ;;  %v1396_v51 = vsel %vm582_vm12, 1.0, %v1814_v3  ;;  %v1397_v15 = vsel %vm583_vm13, 1.0, %v1814_v3 }
  0xad   :  { %vm647_vm15 = vcmp.eq.s32.totalorder %v1914_v25, %v391_v11  ;;  %v1412_v52 = vsel %vm646_vm14, 1.0, %v1814_v3  ;;  %1717 = vmatprep.subr.bf16.mxu0 %v1812_v1  ;;  %v851_v53 = vadd.s32 256, %v1895_v17  ;;  %v852_v54 = vadd.s32 256, %v1898_v18 }
  0xae   :  { %v630_v55 = vadd.f32 %v1396_v51, %v566_v50  ;;  %v631_v56 = vadd.f32 %v1397_v15, %v567_v14  ;;  %v1413_v57 = vsel %vm647_vm15, 1.0, %v1814_v3  ;;  %v392_v58 = vadd.s32 128, %v1901_v19 }
  0xaf   :  { %vm867_vm1 = vcmp.eq.s32.totalorder %v1906_v21, %v851_v53  ;;  %vm868_vm2 = vcmp.eq.s32.totalorder %v1906_v21, %v852_v54  ;;  %vm915_vm3 = vcmp.eq.s32.totalorder %v1908_v22, %v851_v53  ;;  %vm916_vm4 = vcmp.eq.s32.totalorder %v1908_v22, %v852_v54 }
  0xb0   :  { %v694_v59 = vadd.f32 %v1412_v52, %v630_v55  ;;  %v695_v60 = vadd.f32 %v1413_v57, %v631_v56  ;;  %v1428_v17 = vsel %vm867_vm1, 1.0, %v1814_v3  ;;  %v1429_v18 = vsel %vm868_vm2, 1.0, %v1814_v3 }
  0xb1   :  { %v1444_v61 = vsel %vm915_vm3, 1.0, %v1814_v3  ;;  %v1445_v62 = vsel %vm916_vm4, 1.0, %v1814_v3  ;;  %vm979_vm5 = vcmp.eq.s32.totalorder %v1910_v23, %v851_v53  ;;  %vm980_vm6 = vcmp.eq.s32.totalorder %v1910_v23, %v852_v54 }
  0xb2   :  { %v1670_v63 = vpack.c.bf16 %v695_v60, %v694_v59  ;;  %v963_v0 = vadd.f32 %v1444_v61, %v1428_v17  ;;  %v964_v4 = vadd.f32 %v1445_v62, %v1429_v18  ;;  %v1460_v5 = vsel %vm979_vm5, 1.0, %v1814_v3 }
  0xb3   :  { %v1461_v6 = vsel %vm980_vm6, 1.0, %v1814_v3  ;;  %vm1043_vm7 = vcmp.eq.s32.totalorder %v1912_v24, %v851_v53  ;;  %vm1044_vm8 = vcmp.eq.s32.totalorder %v1912_v24, %v852_v54  ;;  %vm1107_vm0 = vcmp.eq.s32.totalorder %v1914_v25, %v851_v53 }
  0xb4   :  { %1671 = vmatpush3.bf16.msra.mxu1 %v1670_v63  ;;  %v1027_v7 = vadd.f32 %v1460_v5, %v963_v0  ;;  %v1028_v8 = vadd.f32 %v1461_v6, %v964_v4  ;;  %v1476_v16 = vsel %vm1043_vm7, 1.0, %v1814_v3  ;;  %v1477_v29 = vsel %vm1044_vm8, 1.0, %v1814_v3 }
  0xb5   :  { %vm1108_vm9 = vcmp.eq.s32.totalorder %v1914_v25, %v852_v54  ;;  %v1492_v30 = vsel %vm1107_vm0, 1.0, %v1814_v3  ;;  %1672 = vmatprep.subr.bf16.mxu1 %v1812_v1  ;;  %v393_v13 = vadd.s32 128, %v1904_v20  ;;  %vm408_vm10 = vcmp.eq.s32.totalorder %v1906_v21, %v392_v58 }
  0xb6   :  { %v1091_v31 = vadd.f32 %v1476_v16, %v1027_v7  ;;  %v1092_v33 = vadd.f32 %v1477_v29, %v1028_v8  ;;  %v1493_v34 = vsel %vm1108_vm9, 1.0, %v1814_v3  ;;  %v1350_v35 = vsel %vm408_vm10, 1.0, %v1814_v3 }
  0xb7   :  { %vm409_vm11 = vcmp.eq.s32.totalorder %v1906_v21, %v393_v13  ;;  %vm456_vm12 = vcmp.eq.s32.totalorder %v1908_v22, %v392_v58  ;;  %vm457_vm13 = vcmp.eq.s32.totalorder %v1908_v22, %v393_v13  ;;  %vm520_vm14 = vcmp.eq.s32.totalorder %v1910_v23, %v392_v58 }
  0xb8   :  { %v1155_v36 = vadd.f32 %v1492_v30, %v1091_v31  ;;  %v1156_v38 = vadd.f32 %v1493_v34, %v1092_v33  ;;  %v1351_v10 = vsel %vm409_vm11, 1.0, %v1814_v3  ;;  %v1366_v11 = vsel %vm456_vm12, 1.0, %v1814_v3 }
  0xb9   :  { %v1367_v2 = vsel %vm457_vm13, 1.0, %v1814_v3  ;;  %v504_v9 = vadd.f32 %v1366_v11, %v1350_v35  ;;  %vm521_vm15 = vcmp.eq.s32.totalorder %v1910_v23, %v393_v13  ;;  %v1382_v39 = vsel %vm520_vm14, 1.0, %v1814_v3 }
  0xba   :  { %v1718_v12 = vpack.c.bf16 %v1156_v38, %v1155_v36  ;;  %v505_v40 = vadd.f32 %v1367_v2, %v1351_v10  ;;  %v1383_v41 = vsel %vm521_vm15, 1.0, %v1814_v3  ;;  %vm584_vm1 = vcmp.eq.s32.totalorder %v1912_v24, %v392_v58 }
  0xbb   :  { %v568_v42 = vadd.f32 %v1382_v39, %v504_v9  ;;  %vm585_vm2 = vcmp.eq.s32.totalorder %v1912_v24, %v393_v13  ;;  %v1398_v43 = vsel %vm584_vm1, 1.0, %v1814_v3  ;;  %vm648_vm3 = vcmp.eq.s32.totalorder %v1914_v25, %v392_v58 }
  0xbc   :  { %1719 = vmatpush3.bf16.msra.mxu0 %v1718_v12  ;;  %v569_v44 = vadd.f32 %v1383_v41, %v505_v40  ;;  %v1399_v45 = vsel %vm585_vm2, 1.0, %v1814_v3  ;;  %vm649_vm4 = vcmp.eq.s32.totalorder %v1914_v25, %v393_v13  ;;  %v1414_v37 = vsel %vm648_vm3, 1.0, %v1814_v3 }
  0xbd   :  { %v632_v46 = vadd.f32 %v1398_v43, %v568_v42  ;;  %v1415_v47 = vsel %vm649_vm4, 1.0, %v1814_v3  ;;  %1720 = vmatprep.subr.bf16.mxu0 %v1812_v1  ;;  %v853_v48 = vadd.s32 256, %v1901_v19  ;;  %v854_v49 = vadd.s32 256, %v1904_v20 }
  0xbe   :  { %v633_v50 = vadd.f32 %v1399_v45, %v569_v44  ;;  %v2468_v14 = vadd.s32 128, %v1917_v26  ;;  %v2471_v51 = vadd.s32 128, %v1920_v27  ;;  %v2474_v15 = vadd.s32 256, %v1917_v26 }
  0xbf   :  { %v696_v52 = vadd.f32 %v1414_v37, %v632_v46  ;;  %vm869_vm5 = vcmp.eq.s32.totalorder %v1906_v21, %v853_v48  ;;  %vm870_vm6 = vcmp.eq.s32.totalorder %v1906_v21, %v854_v49  ;;  %vm917_vm7 = vcmp.eq.s32.totalorder %v1908_v22, %v853_v48 }
  0xc0   :  { %v697_v19 = vadd.f32 %v1415_v47, %v633_v50  ;;  %v1430_v20 = vsel %vm869_vm5, 1.0, %v1814_v3  ;;  %v1431_v53 = vsel %vm870_vm6, 1.0, %v1814_v3  ;;  %vm918_vm8 = vcmp.eq.s32.totalorder %v1908_v22, %v854_v49 }
  0xc1   :  { %v1446_v54 = vsel %vm917_vm7, 1.0, %v1814_v3  ;;  %v1447_v55 = vsel %vm918_vm8, 1.0, %v1814_v3  ;;  %vm981_vm0 = vcmp.eq.s32.totalorder %v1910_v23, %v853_v48  ;;  %vm982_vm9 = vcmp.eq.s32.totalorder %v1910_v23, %v854_v49 }
  0xc2   :  { %v1673_v26 = vpack.c.bf16 %v697_v19, %v696_v52  ;;  %v965_v56 = vadd.f32 %v1446_v54, %v1430_v20  ;;  %v966_v57 = vadd.f32 %v1447_v55, %v1431_v53  ;;  %v1462_v58 = vsel %vm981_vm0, 1.0, %v1814_v3 }
  0xc3   :  { %v1463_v59 = vsel %vm982_vm9, 1.0, %v1814_v3  ;;  %vm1045_vm10 = vcmp.eq.s32.totalorder %v1912_v24, %v853_v48  ;;  %vm1046_vm11 = vcmp.eq.s32.totalorder %v1912_v24, %v854_v49  ;;  %vm1109_vm12 = vcmp.eq.s32.totalorder %v1914_v25, %v853_v48 }
  0xc4   :  { %1674 = vmatpush3.bf16.msra.mxu1 %v1673_v26  ;;  %v1029_v60 = vadd.f32 %v1462_v58, %v965_v56  ;;  %v1030_v17 = vadd.f32 %v1463_v59, %v966_v57  ;;  %v1478_v18 = vsel %vm1045_vm10, 1.0, %v1814_v3  ;;  %v1479_v61 = vsel %vm1046_vm11, 1.0, %v1814_v3 }
  0xc5   :  { %vm1110_vm13 = vcmp.eq.s32.totalorder %v1914_v25, %v854_v49  ;;  %v1494_v62 = vsel %vm1109_vm12, 1.0, %v1814_v3  ;;  %1675 = vmatprep.subr.bf16.mxu1 %v1812_v1  ;;  %vm410_vm14 = vcmp.eq.s32.totalorder %v1906_v21, %v2468_v14  ;;  %vm411_vm15 = vcmp.eq.s32.totalorder %v1906_v21, %v2471_v51 }
  0xc6   :  { %v1093_v63 = vadd.f32 %v1478_v18, %v1029_v60  ;;  %v1094_v0 = vadd.f32 %v1479_v61, %v1030_v17  ;;  %v1495_v4 = vsel %vm1110_vm13, 1.0, %v1814_v3  ;;  %v1352_v5 = vsel %vm410_vm14, 1.0, %v1814_v3 }
  0xc7   :  { %v1353_v6 = vsel %vm411_vm15, 1.0, %v1814_v3  ;;  %vm458_vm1 = vcmp.eq.s32.totalorder %v1908_v22, %v2468_v14  ;;  %vm459_vm2 = vcmp.eq.s32.totalorder %v1908_v22, %v2471_v51  ;;  %vm522_vm3 = vcmp.eq.s32.totalorder %v1910_v23, %v2468_v14 }
  0xc8   :  { %v1157_v7 = vadd.f32 %v1494_v62, %v1093_v63  ;;  %v1158_v8 = vadd.f32 %v1495_v4, %v1094_v0  ;;  %v1368_v16 = vsel %vm458_vm1, 1.0, %v1814_v3  ;;  %v1369_v29 = vsel %vm459_vm2, 1.0, %v1814_v3 }
  0xc9   :  { %v506_v30 = vadd.f32 %v1368_v16, %v1352_v5  ;;  %v507_v13 = vadd.f32 %v1369_v29, %v1353_v6  ;;  %vm523_vm4 = vcmp.eq.s32.totalorder %v1910_v23, %v2471_v51  ;;  %v1384_v31 = vsel %vm522_vm3, 1.0, %v1814_v3 }
  0xca   :  { %v1721_v33 = vpack.c.bf16 %v1158_v8, %v1157_v7  ;;  %v1385_v34 = vsel %vm523_vm4, 1.0, %v1814_v3  ;;  %vm586_vm5 = vcmp.eq.s32.totalorder %v1912_v24, %v2468_v14  ;;  %vm587_vm6 = vcmp.eq.s32.totalorder %v1912_v24, %v2471_v51 }
  0xcb   :  { %v570_v35 = vadd.f32 %v1384_v31, %v506_v30  ;;  %v571_v36 = vadd.f32 %v1385_v34, %v507_v13  ;;  %v1400_v38 = vsel %vm586_vm5, 1.0, %v1814_v3  ;;  %v1401_v10 = vsel %vm587_vm6, 1.0, %v1814_v3 }
  0xcc   :  { %1722 = vmatpush3.bf16.msra.mxu0 %v1721_v33  ;;  %vm650_vm7 = vcmp.eq.s32.totalorder %v1914_v25, %v2468_v14  ;;  %vm651_vm8 = vcmp.eq.s32.totalorder %v1914_v25, %v2471_v51  ;;  %v856_v11 = vadd.s32 256, %v1920_v27  ;;  %vm871_vm0 = vcmp.eq.s32.totalorder %v1906_v21, %v2474_v15 }
  0xcd   :  { %v634_v2 = vadd.f32 %v1400_v38, %v570_v35  ;;  %v635_v9 = vadd.f32 %v1401_v10, %v571_v36  ;;  %v1416_v39 = vsel %vm650_vm7, 1.0, %v1814_v3  ;;  %v1417_v12 = vsel %vm651_vm8, 1.0, %v1814_v3  ;;  %1723 = vmatprep.subr.bf16.mxu0 %v1812_v1 }
  0xce   :  { %vm872_vm9 = vcmp.eq.s32.totalorder %v1906_v21, %v856_v11  ;;  %v1432_v40 = vsel %vm871_vm0, 1.0, %v1814_v3  ;;  %vm919_vm10 = vcmp.eq.s32.totalorder %v1908_v22, %v2474_v15  ;;  %vm920_vm11 = vcmp.eq.s32.totalorder %v1908_v22, %v856_v11 }
  0xcf   :  { %v698_v27 = vadd.f32 %v1416_v39, %v634_v2  ;;  %v699_v41 = vadd.f32 %v1417_v12, %v635_v9  ;;  %v1433_v42 = vsel %vm872_vm9, 1.0, %v1814_v3  ;;  %v1448_v43 = vsel %vm919_vm10, 1.0, %v1814_v3 }
  0xd0   :  { %v1449_v44 = vsel %vm920_vm11, 1.0, %v1814_v3  ;;  %v967_v45 = vadd.f32 %v1448_v43, %v1432_v40  ;;  %vm983_vm12 = vcmp.eq.s32.totalorder %v1910_v23, %v2474_v15  ;;  %vm984_vm13 = vcmp.eq.s32.totalorder %v1910_v23, %v856_v11 }
  0xd1   :  { %v1676_v37 = vpack.c.bf16 %v699_v41, %v698_v27  ;;  %v968_v46 = vadd.f32 %v1449_v44, %v1433_v42  ;;  %v1464_v47 = vsel %vm983_vm12, 1.0, %v1814_v3  ;;  %v1465_v48 = vsel %vm984_vm13, 1.0, %v1814_v3  ;;  %v1163_v42 = vld [vmem:[#allocation5 + $0x8] sm:$0xf] }
  0xd2   :  { %v1031_v49 = vadd.f32 %v1464_v47, %v967_v45  ;;  %vm1047_vm14 = vcmp.eq.s32.totalorder %v1912_v24, %v2474_v15  ;;  %vm1048_vm15 = vcmp.eq.s32.totalorder %v1912_v24, %v856_v11  ;;  %vm1111_vm1 = vcmp.eq.s32.totalorder %v1914_v25, %v2474_v15 }
  0xd3   :  { %1677 = vmatpush3.bf16.msra.mxu1 %v1676_v37  ;;  %v1032_v50 = vadd.f32 %v1465_v48, %v968_v46  ;;  %v1480_v14 = vsel %vm1047_vm14, 1.0, %v1814_v3  ;;  %v1481_v51 = vsel %vm1048_vm15, 1.0, %v1814_v3  ;;  %vm1112_vm2 = vcmp.eq.s32.totalorder %v1914_v25, %v856_v11 }
  0xd4   :  { %v1095_v52 = vadd.f32 %v1480_v14, %v1031_v49  ;;  %v1496_v19 = vsel %vm1111_vm1, 1.0, %v1814_v3  ;;  %v1497_v20 = vsel %vm1112_vm2, 1.0, %v1814_v3  ;;  %1678 = vmatprep.subr.bf16.mxu1 %v1812_v1  ;;  %v396_v53 = vadd.s32 128, %v1923_v28 }
  0xd5   :  { %v1096_v54 = vadd.f32 %v1481_v51, %v1032_v50  ;;  %v397_v15 = vadd.s32 128, %v2142_v32  ;;  %v2558_v55 = vadd.s32 256, %v1923_v28  ;;  %v2561_v26 = vadd.s32 256, %v2142_v32 }
  0xd6   :  { %v1159_v56 = vadd.f32 %v1496_v19, %v1095_v52  ;;  %vm412_vm3 = vcmp.eq.s32.totalorder %v1906_v21, %v396_v53  ;;  %vm460_vm4 = vcmp.eq.s32.totalorder %v1908_v22, %v396_v53  ;;  %vm524_vm5 = vcmp.eq.s32.totalorder %v1910_v23, %v396_v53 }
  0xd7   :  { %v1160_v57 = vadd.f32 %v1497_v20, %v1096_v54  ;;  %vm413_vm6 = vcmp.eq.s32.totalorder %v1906_v21, %v397_v15  ;;  %v1354_v58 = vsel %vm412_vm3, 1.0, %v1814_v3  ;;  %vm461_vm7 = vcmp.eq.s32.totalorder %v1908_v22, %v397_v15 }
  0xd8   :  { %v1355_v28 = vsel %vm413_vm6, 1.0, %v1814_v3  ;;  %v1370_v59 = vsel %vm460_vm4, 1.0, %v1814_v3  ;;  %v1371_v32 = vsel %vm461_vm7, 1.0, %v1814_v3  ;;  %vm525_vm8 = vcmp.eq.s32.totalorder %v1910_v23, %v397_v15 }
  0xd9   :  { %v1724_v60 = vpack.c.bf16 %v1160_v57, %v1159_v56  ;;  %v508_v17 = vadd.f32 %v1370_v59, %v1354_v58  ;;  %v509_v18 = vadd.f32 %v1371_v32, %v1355_v28  ;;  %v1386_v61 = vsel %vm524_vm5, 1.0, %v1814_v3 }
  0xda   :  { %v1387_v62 = vsel %vm525_vm8, 1.0, %v1814_v3  ;;  %vm588_vm0 = vcmp.eq.s32.totalorder %v1912_v24, %v396_v53  ;;  %vm589_vm9 = vcmp.eq.s32.totalorder %v1912_v24, %v397_v15  ;;  %vm652_vm10 = vcmp.eq.s32.totalorder %v1914_v25, %v396_v53 }
  0xdb   :  { %1725 = vmatpush3.bf16.msra.mxu0 %v1724_v60  ;;  %v572_v63 = vadd.f32 %v1386_v61, %v508_v17  ;;  %v573_v0 = vadd.f32 %v1387_v62, %v509_v18  ;;  %v1402_v4 = vsel %vm588_vm0, 1.0, %v1814_v3  ;;  %v1403_v5 = vsel %vm589_vm9, 1.0, %v1814_v3 }
  0xdc   :  { %vm653_vm11 = vcmp.eq.s32.totalorder %v1914_v25, %v397_v15  ;;  %v1418_v6 = vsel %vm652_vm10, 1.0, %v1814_v3  ;;  %1726 = vmatprep.subr.bf16.mxu0 %v1812_v1  ;;  %vm873_vm12 = vcmp.eq.s32.totalorder %v1906_v21, %v2558_v55  ;;  %vm874_vm13 = vcmp.eq.s32.totalorder %v1906_v21, %v2561_v26 }
  0xdd   :  { %v636_v7 = vadd.f32 %v1402_v4, %v572_v63  ;;  %v637_v8 = vadd.f32 %v1403_v5, %v573_v0  ;;  %v1419_v16 = vsel %vm653_vm11, 1.0, %v1814_v3  ;;  %v1434_v29 = vsel %vm873_vm12, 1.0, %v1814_v3 }
  0xde   :  { %v1435_v30 = vsel %vm874_vm13, 1.0, %v1814_v3  ;;  %vm921_vm14 = vcmp.eq.s32.totalorder %v1908_v22, %v2558_v55  ;;  %vm922_vm15 = vcmp.eq.s32.totalorder %v1908_v22, %v2561_v26  ;;  %vm985_vm1 = vcmp.eq.s32.totalorder %v1910_v23, %v2558_v55 }
  0xdf   :  { %v700_v1 = vadd.f32 %v1418_v6, %v636_v7  ;;  %v701_v13 = vadd.f32 %v1419_v16, %v637_v8  ;;  %v1450_v21 = vsel %vm921_vm14, 1.0, %v1814_v3  ;;  %v1451_v31 = vsel %vm922_vm15, 1.0, %v1814_v3 }
  0xe0   :  { %v969_v33 = vadd.f32 %v1450_v21, %v1434_v29  ;;  %v970_v34 = vadd.f32 %v1451_v31, %v1435_v30  ;;  %vm986_vm2 = vcmp.eq.s32.totalorder %v1910_v23, %v2561_v26  ;;  %v1466_v35 = vsel %vm985_vm1, 1.0, %v1814_v3  ;;  %v702_v23 = vld [vmem:[#allocation5 + $0x4] sm:$0xf] }
  0xe1   :  { %v1679_v36 = vpack.c.bf16 %v701_v13, %v700_v1  ;;  %v1467_v38 = vsel %vm986_vm2, 1.0, %v1814_v3  ;;  %vm1049_vm3 = vcmp.eq.s32.totalorder %v1912_v24, %v2558_v55  ;;  %vm1050_vm4 = vcmp.eq.s32.totalorder %v1912_v24, %v2561_v26 }
  0xe2   :  { %v1033_v22 = vadd.f32 %v1466_v35, %v969_v33  ;;  %v1034_v10 = vadd.f32 %v1467_v38, %v970_v34  ;;  %v1482_v11 = vsel %vm1049_vm3, 1.0, %v1814_v3  ;;  %v1483_v2 = vsel %vm1050_vm4, 1.0, %v1814_v3 }
  0xe3   :  { %1680 = vmatpush3.bf16.msra.mxu1 %v1679_v36  ;;  %vm1113_vm5 = vcmp.eq.s32.totalorder %v1914_v25, %v2558_v55  ;;  %vm1114_vm6 = vcmp.eq.s32.totalorder %v1914_v25, %v2561_v26  ;;  %v1500_v25 = vld [vmem:[%s2630_s1] ss:$0 sm:$0xff] }
  0xe4   :  { %v1097_v9 = vadd.f32 %v1482_v11, %v1033_v22  ;;  %v1098_v39 = vadd.f32 %v1483_v2, %v1034_v10  ;;  %v1498_v12 = vsel %vm1113_vm5, 1.0, %v1814_v3  ;;  %v1499_v24 = vsel %vm1114_vm6, 1.0, %v1814_v3 }
  0xe6   :  { %v1161_v40 = vadd.f32 %v1498_v12, %v1097_v9  ;;  %v1162_v27 = vadd.f32 %v1499_v24, %v1098_v39  ;;  %1585 = vmatmul.mubr.f32.vlgmr.msra.gmra.mrb[0].mxu1 %v702_v23 }
  0xe8   :  { %v1727_v41 = vpack.c.bf16 %v1162_v27, %v1161_v40 }
  0xea   :  { %1728 = vmatpush3.bf16.msra.mxu0 %v1727_v41 }
  0xed   :  { %1655 = vmatmul.mubr.f32.vlgmr.msra.gmra.mrb[0].mxu0 %v1163_v42 }
 0x1b9   :  { %v769_v43 = vpop.f32.mrb[0].mxu1 }
 0x1ba   :  { %v1586_v44 = vpop.f32.mrb[1].mxu1 }
 0x1c0   :  { %v1230_v45 = vpop.f32.mrb[0].mxu0 }
 0x1c1   :  { %v1729_v37 = vadd.f32 %v1230_v45, %v769_v43  ;;  %v1656_v46 = vpop.f32.mrb[1].mxu0 }
 0x1c3   :  { %v1242_v47 = vmul.f32 %v1729_v37, %v1500_v25 }
 0x1c5   :  { %1243 = vst [vmem:[#allocation7] sm:$0xf] %v1242_v47 }
 0x1c6   :  { %1793 = shalt.err (!%p1790_p6)
}
 0x1c7   :  { %s1794_s14 = scalar_lea.hbm %s2632_s3, 64 }
 0x1c8   :  { %p1795_p7 = scmp.ne.s32.totalorder %s2632_s3, %s1794_s14  ;;  %p1798_p8 = scmp.lt.u32.totalorder %s1794_s14, %s2632_s3 }
 0x1ca   :  { %p1800_p9 = pnand %p1798_p8, %p1795_p7 }
 0x1cc   :  { %1803 = shalt.err (!%p1800_p9)
}
 0x1cd   :  { %1253 = dma.vmem_to_hbm [thread:$0]  %s1251_s10, 64, %s2632_s3, [#allocation4]  }
 0x1ce   :  { %1808 = dma.done.wait [#allocation4], 64  }
 0x1cf   :  { %1809 = vsyncadd [#allocation4], 4294967232 }
 0x1d0   :  { %1257 = vsyncpa [#allocation3], 1 }
 0x1d1   :  { %1258 = vsyncpa [#allocation6], 1 }
 0x1d2   :  { %1259 = vsyncpa [#allocation4], 1 }

</bundles_post_ra>
